<compile_context>
chip_gen: v5e
topology: v5e:2x2
jax: 0.10.0
libtpu: 0.0.40
codegen_flags: <defaults>
</compile_context>

<pallas_src>
import functools
import numpy as np
import jax
import jax.numpy as jnp
from jax import lax
from jax.experimental import pallas as pl
from jax.experimental.pallas import tpu as pltpu


def _elastic_kernel(x_ref, adj_hbm, incb_hbm, inctg_hbm, out_ref,
                    adj_vm, incb_vm, inctg_vm, x_sc, z_sc, w_sc, dma_sems,
                    *, K, gamma, lambda1):
    # One-shot, single-buffered DMA of the static (bf16) graph matrices HBM -> VMEM.
    copies = (
        pltpu.make_async_copy(adj_hbm, adj_vm, dma_sems.at[0]),
        pltpu.make_async_copy(incb_hbm, incb_vm, dma_sems.at[1]),
        pltpu.make_async_copy(inctg_hbm, inctg_vm, dma_sems.at[2]),
    )
    for cp in copies:
        cp.start()
    for cp in copies:
        cp.wait()

    if K == 0:
        out_ref[...] = x_ref[...]
        return

    # hh is constant across iterations; gamma*hh computed once (hoisted VPU multiply).
    gh = gamma * x_ref[...]

    for k in range(K):  # K is small & static -> unrolled at trace time
        # y = gamma*hh + (1-gamma)*(A_norm @ x) ; (1-gamma) is folded into adj_vm.
        x_in = x_ref[...].astype(jnp.bfloat16) if k == 0 else x_sc[...]
        y = gh + jnp.dot(adj_vm[...], x_in, preferred_element_type=jnp.float32)

        # x_bar = y - gamma*(inc^T @ z): reuse w cached from the previous iteration
        # (z unchanged in between); at k==0 z==0 so the term vanishes (matmul skipped).
        x_bar = y if k == 0 else y - w_sc[...]

        # z_bar = z + beta*(inc @ x_bar); beta is folded into incb_vm.
        zx = jnp.dot(incb_vm[...], x_bar.astype(jnp.bfloat16),
                     preferred_element_type=jnp.float32)
        z_bar = zx if k == 0 else z_sc[...] + zx

        # L21 projection onto the l2 ball of radius lambda1, via rsqrt on the EUP.
        # eps floor avoids the 0/0 NaN of the sqrt/where formulation; zero rows of
        # z_bar stay exactly zero regardless of the (finite) scale value.
        sumsq = jnp.sum(z_bar * z_bar, axis=-1, keepdims=True)
        inv_norm = lax.rsqrt(jnp.maximum(sumsq, 1e-30))
        scale = jnp.minimum(1.0, lambda1 * inv_norm)
        z_new = scale * z_bar

        # w = gamma*(inc^T @ z_new); gamma is folded into inctg_vm.
        w = jnp.dot(inctg_vm[...], z_new.astype(jnp.bfloat16),
                    preferred_element_type=jnp.float32)
        x_new = y - w

        if k < K - 1:
            z_sc[...] = z_new
            w_sc[...] = w                       # reused as next iteration's x_bar term
            x_sc[...] = x_new.astype(jnp.bfloat16)
        else:
            out_ref[...] = x_new.astype(out_ref.dtype)


def _round_up(v, m):
    return (v + m - 1) // m * m


def _pad2(a, rows, cols):
    r, c = a.shape
    if r == rows and c == cols:
        return a
    return jnp.pad(a, ((0, rows - r), (0, cols - c)))


def elastic_conv(x, adj, inc, *, K=3, lambda1=3.0, lambda2=3.0):
    """Pallas ElasticConv forward. x:[N,F] f32, adj:[N,N] f32, inc:[E,N] f32."""
    N, F = x.shape
    E = inc.shape[0]
    gamma = 1.0 / (1.0 + lambda2)
    beta = 1.0 / (2.0 * gamma)

    # ---- glue: pad to TPU-friendly shapes; fold scalars; cast static mats to bf16 ----
    Np = _round_up(N, 16)
    Ep = _round_up(E, 16)
    Fp = _round_up(F, 128)                      # lane-dense feature / output dim

    x_p = _pad2(x.astype(jnp.float32), Np, Fp)
    adj_s = _pad2(((1.0 - gamma) * adj).astype(jnp.bfloat16), Np, Np)    # (1-g)*A_norm
    inc_b = _pad2((beta * inc).astype(jnp.bfloat16), Ep, Np)             # beta*inc
    inct_g = _pad2((gamma * inc.T).astype(jnp.bfloat16), Np, Ep)         # gamma*inc^T

    # ---- explicit VMEM budget (static mats single-buffered, x/out double-buffered) ----
    def _padded_bytes(shape, dtype):
        r, c = shape
        sub = 16 if dtype == jnp.bfloat16 else 8
        item = 2 if dtype == jnp.bfloat16 else 4
        return _round_up(r, sub) * _round_up(c, 128) * item

    vmem_bytes = (
        _padded_bytes((Np, Np), jnp.bfloat16)          # adj scratch
        + _padded_bytes((Ep, Np), jnp.bfloat16)        # beta*inc scratch
        + _padded_bytes((Np, Ep), jnp.bfloat16)        # gamma*inc^T scratch
        + _padded_bytes((Np, Fp), jnp.bfloat16)        # x_sc
        + _padded_bytes((Ep, Fp), jnp.float32)         # z_sc
        + _padded_bytes((Np, Fp), jnp.float32)         # w_sc
        + 2 * _padded_bytes((Np, Fp), jnp.float32)     # x input block (pipelined)
        + 2 * _padded_bytes((Np, Fp), jnp.float32)     # out block (pipelined)
    )
    vmem_limit = int(min(64 * 2**20, max(32 * 2**20, 2 * vmem_bytes)))

    kernel = functools.partial(_elastic_kernel, K=K, gamma=gamma, lambda1=lambda1)

    out_p = pl.pallas_call(
        kernel,
        out_shape=jax.ShapeDtypeStruct((Np, Fp), jnp.float32),
        grid=(1,),
        in_specs=[
            pl.BlockSpec((Np, Fp), lambda i: (0, 0)),   # x (VMEM, auto-pipelined)
            pl.BlockSpec(memory_space=pl.ANY),          # (1-g)*adj   (HBM, manual DMA)
            pl.BlockSpec(memory_space=pl.ANY),          # beta*inc    (HBM, manual DMA)
            pl.BlockSpec(memory_space=pl.ANY),          # gamma*inc^T (HBM, manual DMA)
        ],
        out_specs=pl.BlockSpec((Np, Fp), lambda i: (0, 0)),
        scratch_shapes=[
            pltpu.VMEM((Np, Np), jnp.bfloat16),    # adj   (single-buffered)
            pltpu.VMEM((Ep, Np), jnp.bfloat16),    # beta*inc
            pltpu.VMEM((Np, Ep), jnp.bfloat16),    # gamma*inc^T
            pltpu.VMEM((Np, Fp), jnp.bfloat16),    # current x (feeds next A@x)
            pltpu.VMEM((Ep, Fp), jnp.float32),     # dual variable z
            pltpu.VMEM((Np, Fp), jnp.float32),     # cached w = gamma*(inc^T @ z)
            pltpu.SemaphoreType.DMA((3,)),
        ],
        compiler_params=pltpu.CompilerParams(
            dimension_semantics=("arbitrary",),
            vmem_limit_bytes=vmem_limit,
        ),
    )(x_p, adj_s, inc_b, inct_g)

    return out_p[:N, :F].astype(x.dtype)


# ---------- plain-JAX reference (mirrors emp_forward) for correctness check ----------
def elastic_conv_ref(x, adj, inc, K=3, lambda1=3.0, lambda2=3.0):
    gamma = 1.0 / (1.0 + lambda2)
    beta = 1.0 / (2.0 * gamma)
    hh = x
    z = jnp.zeros((inc.shape[0], x.shape[1]), x.dtype)
    for _ in range(K):
        out = adj @ x
        y = gamma * hh + (1.0 - gamma) * out
        x_bar = y - gamma * (inc.T @ z)
        z_bar = z + beta * (inc @ x_bar)
        rn = jnp.sqrt(jnp.sum(z_bar * z_bar, axis=1, keepdims=True))
        scale = jnp.minimum(rn, lambda1)
        scale = jnp.where(rn > 0.0, scale / rn, 0.0)
        z = scale * z_bar
        x = y - gamma * (inc.T @ z)
    return x


# ---------- graph preprocessing glue (make_self_loops + gcn_norm + get_inc + inc_norm) ----------
def build_graph(num_nodes):
    # deterministic ring graph, stored undirected (both directions)
    src = np.arange(num_nodes)
    dst = (src + 1) % num_nodes
    row = np.concatenate([src, dst])
    col = np.concatenate([dst, src])

    # add self loops
    row = np.concatenate([row, np.arange(num_nodes)])
    col = np.concatenate([col, np.arange(num_nodes)])
    w = np.ones(row.shape[0], dtype=np.float64)

    # symmetric GCN normalization
    deg = np.bincount(row, weights=w, minlength=num_nodes)
    dinv = deg ** -0.5
    w_norm = dinv[row] * w * dinv[col]

    adj = np.zeros((num_nodes, num_nodes), dtype=np.float64)
    adj[row, col] = w_norm

    # get_inc: keep edges with row > col (drops self loops & one direction)
    mask = row > col
    r, c = row[mask], col[mask]
    E = r.shape[0]
    inc = np.zeros((E, num_nodes), dtype=np.float64)
    inc[np.arange(E), r] = 1.0
    inc[np.arange(E), c] = -1.0

    # inc_norm: column scale by deg(edge_index[0])^{-1/2}, clamped at 1
    deg2 = np.clip(np.bincount(row, minlength=num_nodes).astype(np.float64), 1.0, None)
    inc = inc * (deg2 ** -0.5)[None, :]

    return (jnp.asarray(adj, dtype=jnp.float32),
            jnp.asarray(inc, dtype=jnp.float32))


if __name__ == "__main__":
    N, F = 64, 32  # 64 nodes, 32 features  -> E = 64 undirected edges (ring)
    key = jax.random.PRNGKey(0)
    x = jax.random.normal(key, (N, F), dtype=jnp.float32)

    adj, inc = build_graph(N)

    out = elastic_conv(x, adj, inc, K=3, lambda1=3.0, lambda2=3.0)
    out = jax.block_until_ready(out)

    ref = elastic_conv_ref(x, adj, inc, K=3, lambda1=3.0, lambda2=3.0)
    assert out.shape == (N, F) and out.dtype == jnp.float32
    # bf16 MXU operands with f32 accumulation -> loosened tolerance vs f32 reference
    assert jnp.allclose(out, ref, atol=5e-2, rtol=5e-2), "mismatch vs JAX reference"

    print("KERNEL_OK")
</pallas_src>

<mosaic_0001>
module attributes {stable_mosaic.version = 11 : i64} {
  func.func @_elastic_kernel(%arg0: i32, %arg1: memref<64x128xf32, #tpu.memory_space<vmem>>, %arg2: memref<64x64xbf16, #tpu.memory_space<any>>, %arg3: memref<64x64xbf16, #tpu.memory_space<any>>, %arg4: memref<64x64xbf16, #tpu.memory_space<any>>, %arg5: memref<64x128xf32, #tpu.memory_space<vmem>>, %arg6: memref<64x64xbf16, #tpu.memory_space<vmem>>, %arg7: memref<64x64xbf16, #tpu.memory_space<vmem>>, %arg8: memref<64x64xbf16, #tpu.memory_space<vmem>>, %arg9: memref<64x128xbf16, #tpu.memory_space<vmem>>, %arg10: memref<64x128xf32, #tpu.memory_space<vmem>>, %arg11: memref<64x128xf32, #tpu.memory_space<vmem>>, %arg12: memref<3x!tpu.dma_semaphore, #tpu.memory_space<semaphore_mem>>) attributes {dimension_semantics = [#tpu.dimension_semantics<arbitrary>], iteration_bounds = array<i64: 1>, scalar_prefetch = 0 : i64, scratch_operands = 7 : i64, tpu.core_type = #tpu.core_type<tc>, window_params = [{pipeline_mode = #tpu.pipeline_mode<synchronous>, transform_indices = @transform_0, window_bounds = array<i64: 64, 128>}, {}, {}, {}, {pipeline_mode = #tpu.pipeline_mode<synchronous>, transform_indices = @transform_4, window_bounds = array<i64: 64, 128>}]} {
    %c0_i32 = arith.constant 0 : i32
    %0 = tpu.memref_slice %arg12[%c0_i32] : memref<3x!tpu.dma_semaphore, #tpu.memory_space<semaphore_mem>> -> memref<1x!tpu.dma_semaphore, #tpu.memory_space<semaphore_mem>>
    %1 = tpu.memref_squeeze %0 : memref<1x!tpu.dma_semaphore, #tpu.memory_space<semaphore_mem>> -> memref<!tpu.dma_semaphore, #tpu.memory_space<semaphore_mem>>
    tpu.enqueue_dma source(%arg2 : memref<64x64xbf16, #tpu.memory_space<any>>) target(%arg6 : memref<64x64xbf16, #tpu.memory_space<vmem>>) target_semaphore(%1 : memref<!tpu.dma_semaphore, #tpu.memory_space<semaphore_mem>>)
    %c1_i32 = arith.constant 1 : i32
    %2 = tpu.memref_slice %arg12[%c1_i32] : memref<3x!tpu.dma_semaphore, #tpu.memory_space<semaphore_mem>> -> memref<1x!tpu.dma_semaphore, #tpu.memory_space<semaphore_mem>>
    %3 = tpu.memref_squeeze %2 : memref<1x!tpu.dma_semaphore, #tpu.memory_space<semaphore_mem>> -> memref<!tpu.dma_semaphore, #tpu.memory_space<semaphore_mem>>
    tpu.enqueue_dma source(%arg3 : memref<64x64xbf16, #tpu.memory_space<any>>) target(%arg7 : memref<64x64xbf16, #tpu.memory_space<vmem>>) target_semaphore(%3 : memref<!tpu.dma_semaphore, #tpu.memory_space<semaphore_mem>>)
    %c2_i32 = arith.constant 2 : i32
    %4 = tpu.memref_slice %arg12[%c2_i32] : memref<3x!tpu.dma_semaphore, #tpu.memory_space<semaphore_mem>> -> memref<1x!tpu.dma_semaphore, #tpu.memory_space<semaphore_mem>>
    %5 = tpu.memref_squeeze %4 : memref<1x!tpu.dma_semaphore, #tpu.memory_space<semaphore_mem>> -> memref<!tpu.dma_semaphore, #tpu.memory_space<semaphore_mem>>
    tpu.enqueue_dma source(%arg4 : memref<64x64xbf16, #tpu.memory_space<any>>) target(%arg8 : memref<64x64xbf16, #tpu.memory_space<vmem>>) target_semaphore(%5 : memref<!tpu.dma_semaphore, #tpu.memory_space<semaphore_mem>>)
    %c0_i32_0 = arith.constant 0 : i32
    %6 = tpu.memref_slice %arg12[%c0_i32_0] : memref<3x!tpu.dma_semaphore, #tpu.memory_space<semaphore_mem>> -> memref<1x!tpu.dma_semaphore, #tpu.memory_space<semaphore_mem>>
    %7 = tpu.memref_squeeze %6 : memref<1x!tpu.dma_semaphore, #tpu.memory_space<semaphore_mem>> -> memref<!tpu.dma_semaphore, #tpu.memory_space<semaphore_mem>>
    tpu.wait_dma2 semaphore(%7 : memref<!tpu.dma_semaphore, #tpu.memory_space<semaphore_mem>>) src(%arg2 : memref<64x64xbf16, #tpu.memory_space<any>>) dst(%arg6 : memref<64x64xbf16, #tpu.memory_space<vmem>>)
    %c1_i32_1 = arith.constant 1 : i32
    %8 = tpu.memref_slice %arg12[%c1_i32_1] : memref<3x!tpu.dma_semaphore, #tpu.memory_space<semaphore_mem>> -> memref<1x!tpu.dma_semaphore, #tpu.memory_space<semaphore_mem>>
    %9 = tpu.memref_squeeze %8 : memref<1x!tpu.dma_semaphore, #tpu.memory_space<semaphore_mem>> -> memref<!tpu.dma_semaphore, #tpu.memory_space<semaphore_mem>>
    tpu.wait_dma2 semaphore(%9 : memref<!tpu.dma_semaphore, #tpu.memory_space<semaphore_mem>>) src(%arg3 : memref<64x64xbf16, #tpu.memory_space<any>>) dst(%arg7 : memref<64x64xbf16, #tpu.memory_space<vmem>>)
    %c2_i32_2 = arith.constant 2 : i32
    %10 = tpu.memref_slice %arg12[%c2_i32_2] : memref<3x!tpu.dma_semaphore, #tpu.memory_space<semaphore_mem>> -> memref<1x!tpu.dma_semaphore, #tpu.memory_space<semaphore_mem>>
    %11 = tpu.memref_squeeze %10 : memref<1x!tpu.dma_semaphore, #tpu.memory_space<semaphore_mem>> -> memref<!tpu.dma_semaphore, #tpu.memory_space<semaphore_mem>>
    tpu.wait_dma2 semaphore(%11 : memref<!tpu.dma_semaphore, #tpu.memory_space<semaphore_mem>>) src(%arg4 : memref<64x64xbf16, #tpu.memory_space<any>>) dst(%arg8 : memref<64x64xbf16, #tpu.memory_space<vmem>>)
    %c0 = arith.constant 0 : index
    %c0_3 = arith.constant 0 : index
    %12 = vector.load %arg1[%c0, %c0_3] : memref<64x128xf32, #tpu.memory_space<vmem>>, vector<64x128xf32>
    %cst = arith.constant 2.500000e-01 : f32
    %13 = vector.broadcast %cst : f32 to vector<64x128xf32>
    %14 = arith.mulf %13, %12 : vector<64x128xf32>
    %c0_4 = arith.constant 0 : index
    %c0_5 = arith.constant 0 : index
    %15 = vector.load %arg1[%c0_4, %c0_5] : memref<64x128xf32, #tpu.memory_space<vmem>>, vector<64x128xf32>
    %16 = arith.truncf %15 : vector<64x128xf32> to vector<64x128xbf16>
    %c0_6 = arith.constant 0 : index
    %c0_7 = arith.constant 0 : index
    %17 = vector.load %arg6[%c0_6, %c0_7] : memref<64x64xbf16, #tpu.memory_space<vmem>>, vector<64x64xbf16>
    %cst_8 = arith.constant dense<0.000000e+00> : vector<64x128xf32>
    %18 = tpu.matmul %17, %16, %cst_8 {dimension_numbers = #tpu.dot_dimension_numbers<[1], [0], [0], [1], [0, 0, 1, 1], [], []>} : vector<64x64xbf16>, vector<64x128xbf16>, vector<64x128xf32> -> vector<64x128xf32>
    %19 = arith.addf %14, %18 : vector<64x128xf32>
    %c0_9 = arith.constant 0 : index
    %c0_10 = arith.constant 0 : index
    %20 = vector.load %arg7[%c0_9, %c0_10] : memref<64x64xbf16, #tpu.memory_space<vmem>>, vector<64x64xbf16>
    %21 = arith.truncf %19 : vector<64x128xf32> to vector<64x128xbf16>
    %cst_11 = arith.constant dense<0.000000e+00> : vector<64x128xf32>
    %22 = tpu.matmul %20, %21, %cst_11 {dimension_numbers = #tpu.dot_dimension_numbers<[1], [0], [0], [1], [0, 0, 1, 1], [], []>} : vector<64x64xbf16>, vector<64x128xbf16>, vector<64x128xf32> -> vector<64x128xf32>
    %23 = arith.mulf %22, %22 : vector<64x128xf32>
    %cst_12 = arith.constant dense<0.000000e+00> : vector<64xf32>
    %24 = vector.multi_reduction <add>, %23, %cst_12 [1] : vector<64x128xf32> to vector<64xf32>
    %25 = vector.shape_cast %24 : vector<64xf32> to vector<64x1xf32>
    %cst_13 = arith.constant 1.000000e-30 : f32
    %26 = vector.broadcast %cst_13 : f32 to vector<64x1xf32>
    %27 = arith.maximumf %25, %26 : vector<64x1xf32>
    %28 = math.rsqrt %27 : vector<64x1xf32>
    %cst_14 = arith.constant 3.000000e+00 : f32
    %29 = vector.broadcast %cst_14 : f32 to vector<64x1xf32>
    %30 = arith.mulf %29, %28 : vector<64x1xf32>
    %cst_15 = arith.constant 1.000000e+00 : f32
    %31 = vector.broadcast %cst_15 : f32 to vector<64x1xf32>
    %32 = arith.minimumf %31, %30 : vector<64x1xf32>
    %33 = vector.broadcast %32 : vector<64x1xf32> to vector<64x128xf32>
    %34 = arith.mulf %33, %22 : vector<64x128xf32>
    %c0_16 = arith.constant 0 : index
    %c0_17 = arith.constant 0 : index
    %35 = vector.load %arg8[%c0_16, %c0_17] : memref<64x64xbf16, #tpu.memory_space<vmem>>, vector<64x64xbf16>
    %36 = arith.truncf %34 : vector<64x128xf32> to vector<64x128xbf16>
    %cst_18 = arith.constant dense<0.000000e+00> : vector<64x128xf32>
    %37 = tpu.matmul %35, %36, %cst_18 {dimension_numbers = #tpu.dot_dimension_numbers<[1], [0], [0], [1], [0, 0, 1, 1], [], []>} : vector<64x64xbf16>, vector<64x128xbf16>, vector<64x128xf32> -> vector<64x128xf32>
    %38 = arith.subf %19, %37 : vector<64x128xf32>
    %c0_19 = arith.constant 0 : index
    %c0_20 = arith.constant 0 : index
    %39 = vector.load %arg10[%c0_19, %c0_20] : memref<64x128xf32, #tpu.memory_space<vmem>>, vector<64x128xf32>
    tpu.vector_store %arg10[%c0_19, %c0_20], %34 {strides = array<i32>} : memref<64x128xf32, #tpu.memory_space<vmem>>, vector<64x128xf32>,
    %c0_21 = arith.constant 0 : index
    %c0_22 = arith.constant 0 : index
    %40 = vector.load %arg11[%c0_21, %c0_22] : memref<64x128xf32, #tpu.memory_space<vmem>>, vector<64x128xf32>
    tpu.vector_store %arg11[%c0_21, %c0_22], %37 {strides = array<i32>} : memref<64x128xf32, #tpu.memory_space<vmem>>, vector<64x128xf32>,
    %41 = arith.truncf %38 : vector<64x128xf32> to vector<64x128xbf16>
    %c0_23 = arith.constant 0 : index
    %c0_24 = arith.constant 0 : index
    %42 = vector.load %arg9[%c0_23, %c0_24] : memref<64x128xbf16, #tpu.memory_space<vmem>>, vector<64x128xbf16>
    tpu.vector_store %arg9[%c0_23, %c0_24], %41 {strides = array<i32>} : memref<64x128xbf16, #tpu.memory_space<vmem>>, vector<64x128xbf16>,
    %c0_25 = arith.constant 0 : index
    %c0_26 = arith.constant 0 : index
    %43 = vector.load %arg9[%c0_25, %c0_26] : memref<64x128xbf16, #tpu.memory_space<vmem>>, vector<64x128xbf16>
    %c0_27 = arith.constant 0 : index
    %c0_28 = arith.constant 0 : index
    %44 = vector.load %arg6[%c0_27, %c0_28] : memref<64x64xbf16, #tpu.memory_space<vmem>>, vector<64x64xbf16>
    %cst_29 = arith.constant dense<0.000000e+00> : vector<64x128xf32>
    %45 = tpu.matmul %44, %43, %cst_29 {dimension_numbers = #tpu.dot_dimension_numbers<[1], [0], [0], [1], [0, 0, 1, 1], [], []>} : vector<64x64xbf16>, vector<64x128xbf16>, vector<64x128xf32> -> vector<64x128xf32>
    %46 = arith.addf %14, %45 : vector<64x128xf32>
    %c0_30 = arith.constant 0 : index
    %c0_31 = arith.constant 0 : index
    %47 = vector.load %arg11[%c0_30, %c0_31] : memref<64x128xf32, #tpu.memory_space<vmem>>, vector<64x128xf32>
    %48 = arith.subf %46, %47 : vector<64x128xf32>
    %c0_32 = arith.constant 0 : index
    %c0_33 = arith.constant 0 : index
    %49 = vector.load %arg7[%c0_32, %c0_33] : memref<64x64xbf16, #tpu.memory_space<vmem>>, vector<64x64xbf16>
    %50 = arith.truncf %48 : vector<64x128xf32> to vector<64x128xbf16>
    %cst_34 = arith.constant dense<0.000000e+00> : vector<64x128xf32>
    %51 = tpu.matmul %49, %50, %cst_34 {dimension_numbers = #tpu.dot_dimension_numbers<[1], [0], [0], [1], [0, 0, 1, 1], [], []>} : vector<64x64xbf16>, vector<64x128xbf16>, vector<64x128xf32> -> vector<64x128xf32>
    %c0_35 = arith.constant 0 : index
    %c0_36 = arith.constant 0 : index
    %52 = vector.load %arg10[%c0_35, %c0_36] : memref<64x128xf32, #tpu.memory_space<vmem>>, vector<64x128xf32>
    %53 = arith.addf %52, %51 : vector<64x128xf32>
    %54 = arith.mulf %53, %53 : vector<64x128xf32>
    %cst_37 = arith.constant dense<0.000000e+00> : vector<64xf32>
    %55 = vector.multi_reduction <add>, %54, %cst_37 [1] : vector<64x128xf32> to vector<64xf32>
    %56 = vector.shape_cast %55 : vector<64xf32> to vector<64x1xf32>
    %cst_38 = arith.constant 1.000000e-30 : f32
    %57 = vector.broadcast %cst_38 : f32 to vector<64x1xf32>
    %58 = arith.maximumf %56, %57 : vector<64x1xf32>
    %59 = math.rsqrt %58 : vector<64x1xf32>
    %cst_39 = arith.constant 3.000000e+00 : f32
    %60 = vector.broadcast %cst_39 : f32 to vector<64x1xf32>
    %61 = arith.mulf %60, %59 : vector<64x1xf32>
    %cst_40 = arith.constant 1.000000e+00 : f32
    %62 = vector.broadcast %cst_40 : f32 to vector<64x1xf32>
    %63 = arith.minimumf %62, %61 : vector<64x1xf32>
    %64 = vector.broadcast %63 : vector<64x1xf32> to vector<64x128xf32>
    %65 = arith.mulf %64, %53 : vector<64x128xf32>
    %c0_41 = arith.constant 0 : index
    %c0_42 = arith.constant 0 : index
    %66 = vector.load %arg8[%c0_41, %c0_42] : memref<64x64xbf16, #tpu.memory_space<vmem>>, vector<64x64xbf16>
    %67 = arith.truncf %65 : vector<64x128xf32> to vector<64x128xbf16>
    %cst_43 = arith.constant dense<0.000000e+00> : vector<64x128xf32>
    %68 = tpu.matmul %66, %67, %cst_43 {dimension_numbers = #tpu.dot_dimension_numbers<[1], [0], [0], [1], [0, 0, 1, 1], [], []>} : vector<64x64xbf16>, vector<64x128xbf16>, vector<64x128xf32> -> vector<64x128xf32>
    %69 = arith.subf %46, %68 : vector<64x128xf32>
    %c0_44 = arith.constant 0 : index
    %c0_45 = arith.constant 0 : index
    %70 = vector.load %arg10[%c0_44, %c0_45] : memref<64x128xf32, #tpu.memory_space<vmem>>, vector<64x128xf32>
    tpu.vector_store %arg10[%c0_44, %c0_45], %65 {strides = array<i32>} : memref<64x128xf32, #tpu.memory_space<vmem>>, vector<64x128xf32>,
    %c0_46 = arith.constant 0 : index
    %c0_47 = arith.constant 0 : index
    %71 = vector.load %arg11[%c0_46, %c0_47] : memref<64x128xf32, #tpu.memory_space<vmem>>, vector<64x128xf32>
    tpu.vector_store %arg11[%c0_46, %c0_47], %68 {strides = array<i32>} : memref<64x128xf32, #tpu.memory_space<vmem>>, vector<64x128xf32>,
    %72 = arith.truncf %69 : vector<64x128xf32> to vector<64x128xbf16>
    %c0_48 = arith.constant 0 : index
    %c0_49 = arith.constant 0 : index
    %73 = vector.load %arg9[%c0_48, %c0_49] : memref<64x128xbf16, #tpu.memory_space<vmem>>, vector<64x128xbf16>
    tpu.vector_store %arg9[%c0_48, %c0_49], %72 {strides = array<i32>} : memref<64x128xbf16, #tpu.memory_space<vmem>>, vector<64x128xbf16>,
    %c0_50 = arith.constant 0 : index
    %c0_51 = arith.constant 0 : index
    %74 = vector.load %arg9[%c0_50, %c0_51] : memref<64x128xbf16, #tpu.memory_space<vmem>>, vector<64x128xbf16>
    %c0_52 = arith.constant 0 : index
    %c0_53 = arith.constant 0 : index
    %75 = vector.load %arg6[%c0_52, %c0_53] : memref<64x64xbf16, #tpu.memory_space<vmem>>, vector<64x64xbf16>
    %cst_54 = arith.constant dense<0.000000e+00> : vector<64x128xf32>
    %76 = tpu.matmul %75, %74, %cst_54 {dimension_numbers = #tpu.dot_dimension_numbers<[1], [0], [0], [1], [0, 0, 1, 1], [], []>} : vector<64x64xbf16>, vector<64x128xbf16>, vector<64x128xf32> -> vector<64x128xf32>
    %77 = arith.addf %14, %76 : vector<64x128xf32>
    %c0_55 = arith.constant 0 : index
    %c0_56 = arith.constant 0 : index
    %78 = vector.load %arg11[%c0_55, %c0_56] : memref<64x128xf32, #tpu.memory_space<vmem>>, vector<64x128xf32>
    %79 = arith.subf %77, %78 : vector<64x128xf32>
    %c0_57 = arith.constant 0 : index
    %c0_58 = arith.constant 0 : index
    %80 = vector.load %arg7[%c0_57, %c0_58] : memref<64x64xbf16, #tpu.memory_space<vmem>>, vector<64x64xbf16>
    %81 = arith.truncf %79 : vector<64x128xf32> to vector<64x128xbf16>
    %cst_59 = arith.constant dense<0.000000e+00> : vector<64x128xf32>
    %82 = tpu.matmul %80, %81, %cst_59 {dimension_numbers = #tpu.dot_dimension_numbers<[1], [0], [0], [1], [0, 0, 1, 1], [], []>} : vector<64x64xbf16>, vector<64x128xbf16>, vector<64x128xf32> -> vector<64x128xf32>
    %c0_60 = arith.constant 0 : index
    %c0_61 = arith.constant 0 : index
    %83 = vector.load %arg10[%c0_60, %c0_61] : memref<64x128xf32, #tpu.memory_space<vmem>>, vector<64x128xf32>
    %84 = arith.addf %83, %82 : vector<64x128xf32>
    %85 = arith.mulf %84, %84 : vector<64x128xf32>
    %cst_62 = arith.constant dense<0.000000e+00> : vector<64xf32>
    %86 = vector.multi_reduction <add>, %85, %cst_62 [1] : vector<64x128xf32> to vector<64xf32>
    %87 = vector.shape_cast %86 : vector<64xf32> to vector<64x1xf32>
    %cst_63 = arith.constant 1.000000e-30 : f32
    %88 = vector.broadcast %cst_63 : f32 to vector<64x1xf32>
    %89 = arith.maximumf %87, %88 : vector<64x1xf32>
    %90 = math.rsqrt %89 : vector<64x1xf32>
    %cst_64 = arith.constant 3.000000e+00 : f32
    %91 = vector.broadcast %cst_64 : f32 to vector<64x1xf32>
    %92 = arith.mulf %91, %90 : vector<64x1xf32>
    %cst_65 = arith.constant 1.000000e+00 : f32
    %93 = vector.broadcast %cst_65 : f32 to vector<64x1xf32>
    %94 = arith.minimumf %93, %92 : vector<64x1xf32>
    %95 = vector.broadcast %94 : vector<64x1xf32> to vector<64x128xf32>
    %96 = arith.mulf %95, %84 : vector<64x128xf32>
    %c0_66 = arith.constant 0 : index
    %c0_67 = arith.constant 0 : index
    %97 = vector.load %arg8[%c0_66, %c0_67] : memref<64x64xbf16, #tpu.memory_space<vmem>>, vector<64x64xbf16>
    %98 = arith.truncf %96 : vector<64x128xf32> to vector<64x128xbf16>
    %cst_68 = arith.constant dense<0.000000e+00> : vector<64x128xf32>
    %99 = tpu.matmul %97, %98, %cst_68 {dimension_numbers = #tpu.dot_dimension_numbers<[1], [0], [0], [1], [0, 0, 1, 1], [], []>} : vector<64x64xbf16>, vector<64x128xbf16>, vector<64x128xf32> -> vector<64x128xf32>
    %100 = arith.subf %77, %99 : vector<64x128xf32>
    %c0_69 = arith.constant 0 : index
    %c0_70 = arith.constant 0 : index
    %101 = vector.load %arg5[%c0_69, %c0_70] : memref<64x128xf32, #tpu.memory_space<vmem>>, vector<64x128xf32>
    tpu.vector_store %arg5[%c0_69, %c0_70], %100 {strides = array<i32>} : memref<64x128xf32, #tpu.memory_space<vmem>>, vector<64x128xf32>,
    return
  }
  func.func @transform_0(%arg0: i32) -> (i32, i32) {
    %c0_i32 = arith.constant 0 : i32
    %c0_i32_0 = arith.constant 0 : i32
    %c0_i32_1 = arith.constant 0 : i32
    return %c0_i32, %c0_i32_0 : i32, i32
  }
  func.func @transform_4(%arg0: i32) -> (i32, i32) {
    %c0_i32 = arith.constant 0 : i32
    %c0_i32_0 = arith.constant 0 : i32
    %c0_i32_1 = arith.constant 0 : i32
    return %c0_i32, %c0_i32_0 : i32, i32
  }
}

</mosaic_0001>

<bundles_post_ra>
// kernel: tpu_custom_call.1
= control target key start
LH: loop header
LB: loop body
LE: loop exit
PB: predicated region body
PF: predicated region fallthrough
CT: control target
= control target key end

     0   :  { %9 = vsyncpa [#allocation10], 0  ;;  %s2559_s0 = inlined_call_operand.hbm [shape: f32[64,128], index: 0, kind: input, shape index: {}]   ;;  %s2560_s1 = inlined_call_operand.hbm [shape: bf16[64,64], index: 1, kind: input, shape index: {}]   ;;  %s2561_s2 = inlined_call_operand.hbm [shape: bf16[64,64], index: 2, kind: input, shape index: {}]   ;;  %s2562_s3 = inlined_call_operand.hbm [shape: bf16[64,64], index: 3, kind: input, shape index: {}]   ;;  %s2563_s4 = inlined_call_operand.hbm [shape: f32[64,128], index: 4, kind: output, shape index: {}]  }
   0x1   :  { %10 = vsyncpa [#allocation11], 0  ;;  %s15_s17 = sshll.u32 %s2559_s0, 4  ;;  %s1941_s18 = smov [#allocation9]   ;;  %s16_s17 = int_to_ptr.hbm [resolvable:$true] %s15_s17 }
   0x2   :  { %s17_s19 = sshll.u32 %s1941_s18, 4  ;;  %s1942_s20 = smov 128   ;;  %s18_s19 = int_to_ptr.vmem [resolvable:$true] %s17_s19 }
   0x3   :  { %s1943_s21 = smov 8  }
   0x4   :  { %23 = dma.hbm_to_vmem [thread:$0]  %s16_s17, 1024, %s18_s19, [#allocation10], %s1942_s20, %s1942_s20, %s1943_s21  }
   0x5   :  { %1931 = dma.done.wait [#allocation10], 1024  }
   0x6   :  { %1932 = vsyncadd [#allocation10], 4294966272  ;;  %s36_s24 = sshll.u32 %s2560_s1, 4  ;;  %s1944_s25 = smov [#allocation2]   ;;  %s37_s24 = int_to_ptr.hbm [resolvable:$true] %s36_s24 }
   0x7   :  { %s38_s26 = sshll.u32 %s1944_s25, 4  ;;  %s50_s28 = sshll.u32 %s2561_s2, 4  ;;  %s39_s26 = int_to_ptr.vmem [resolvable:$true] %s38_s26  ;;  %s51_s28 = int_to_ptr.hbm [resolvable:$true] %s50_s28 }
   0x8   :  { %41 = dma.hbm_to_vmem [thread:$0]  %s37_s24, 512, %s39_s26, [#allocation8] }
   0x9   :  { %s1945_s29 = smov [#allocation3]   ;;  %s64_s7 = sshll.u32 %s2562_s3, 4  ;;  %s65_s7 = int_to_ptr.hbm [resolvable:$true] %s64_s7 }
   0xa   :  { %s52_s30 = sshll.u32 %s1945_s29, 4  ;;  %s1946_s1 = smov [#allocation4]   ;;  %s53_s30 = int_to_ptr.vmem [resolvable:$true] %s52_s30 }
   0xb   :  { %55 = dma.hbm_to_vmem [thread:$0]  %s51_s28, 512, %s53_s30, [#allocation8 + $0x1] }
   0xc   :  { %s66_s8 = sshll.u32 %s1946_s1, 4  ;;  %s67_s8 = int_to_ptr.vmem [resolvable:$true] %s66_s8 }
   0xd   :  { %69 = dma.hbm_to_vmem [thread:$0]  %s65_s7, 512, %s67_s8, [#allocation8 + $0x2] }
   0xe   :  { %1933 = dma.done.wait [#allocation8], 512 }
   0xf   :  { %1934 = vsyncadd [#allocation8], 4294966784 }
  0x10   :  { %1935 = dma.done.wait [#allocation8 + $0x1], 512 }
  0x11   :  { %1936 = vsyncadd [#allocation8 + $0x1], 4294966784 }
  0x12   :  { %1937 = dma.done.wait [#allocation8 + $0x2], 512 }
  0x13   :  { %1938 = vsyncadd [#allocation8 + $0x2], 4294966784  ;;  %v84_v0 = vld [vmem:[#allocation9 + $0x30] sm:$0xff]  ;;  %v85_v1 = vld [vmem:[#allocation9 + $0x38] sm:$0xff]  ;;  %vm126_vm0 = vcmask 523264   ;;  %s1947_s2 = smov [#allocation12]  }
  0x14   :  { %v82_v2 = vld [vmem:[#allocation9 + $0x20] sm:$0xff]  ;;  %v97_v3 = vpack.c.bf16 %v85_v1, %v84_v0  ;;  %v83_v4 = vld [vmem:[#allocation9 + $0x28] sm:$0xff]  ;;  %v80_v6 = vld [vmem:[#allocation9 + $0x10] sm:$0xff]  ;;  %v1992_v19 = vmul.f32 0.25, %v84_v0  ;;  %v1994_v20 = vmul.f32 0.25, %v85_v1  ;;  %s1404_s3 = sshll.u32 %s1947_s2, 4  ;;  %s1405_s3 = int_to_ptr.vmem [resolvable:$true] %s1404_s3 }
  0x15   :  { %v96_v5 = vpack.c.bf16 %v83_v4, %v82_v2  ;;  %v81_v7 = vld [vmem:[#allocation9 + $0x18] sm:$0xff]  ;;  %v78_v9 = vld [vmem:[#allocation9] sm:$0xff]  ;;  %v79_v10 = vld [vmem:[#allocation9 + $0x8] sm:$0xff]  ;;  %v1996_v22 = vmul.f32 0.25, %v83_v4  ;;  %v1998_v25 = vmul.f32 0.25, %v82_v2  ;;  %v2006_v28 = vmul.f32 0.25, %v80_v6 }
  0x16   :  { %1745 = vmatpush.bf16.msra.mxu2 %v97_v3  ;;  %1746 = vmatpush.bf16.msra.mxu3 %v97_v3  ;;  %v95_v8 = vpack.c.bf16 %v81_v7, %v80_v6  ;;  %v94_v11 = vpack.c.bf16 %v79_v10, %v78_v9  ;;  %v1656_v12 = vld [vmem:[#allocation2 + $0x10] sm:$0xff]  ;;  %v1657_v13 = vld [vmem:[#allocation2 + $0x18] sm:$0xff]  ;;  %v1655_v14 = vld [vmem:[#allocation2 + $0x8] sm:$0xff]  ;;  %v2008_v29 = vmul.f32 0.25, %v81_v7  ;;  %v2018_v34 = vmul.f32 0.25, %v78_v9  ;;  %s1406_s11 = sshll.u32 %s2563_s4, 4  ;;  %s1407_s11 = int_to_ptr.hbm [resolvable:$true] %s1406_s11 }
  0x17   :  { %1744 = vmatpush.bf16.msra.mxu1 %v97_v3  ;;  %143 = vmatpush.bf16.msra.mxu0 %v97_v3  ;;  %v1654_v15 = vld [vmem:[#allocation2] sm:$0xff]  ;;  %v2026_v37 = vmul.f32 0.25, %v79_v10  ;;  %v1659_v45 = vld [vmem:[#allocation3 + $0x8] sm:$0xff]  ;;  %v1660_v46 = vld [vmem:[#allocation3 + $0x10] sm:$0xff] }
  0x18   :  { %v1658_v44 = vld [vmem:[#allocation3] sm:$0xff]  ;;  %v1661_v47 = vld [vmem:[#allocation3 + $0x18] sm:$0xff] }
  0x1a   :  { %1748 = vmatpush.bf16.msra.mxu2 %v96_v5  ;;  %1749 = vmatpush.bf16.msra.mxu3 %v96_v5 }
  0x1b   :  { %1747 = vmatpush.bf16.msra.mxu1 %v96_v5  ;;  %144 = vmatpush.bf16.msra.mxu0 %v96_v5 }
  0x1e   :  { %1751 = vmatpush.bf16.msra.mxu2 %v95_v8  ;;  %1752 = vmatpush.bf16.msra.mxu3 %v95_v8 }
  0x1f   :  { %1750 = vmatpush.bf16.msra.mxu1 %v95_v8  ;;  %145 = vmatpush.bf16.msra.mxu0 %v95_v8 }
  0x22   :  { %1754 = vmatpush.bf16.msra.mxu2 %v94_v11  ;;  %1755 = vmatpush.bf16.msra.mxu3 %v94_v11 }
  0x23   :  { %1753 = vmatpush.bf16.msra.mxu1 %v94_v11  ;;  %146 = vmatpush.bf16.msra.mxu0 %v94_v11 }
  0x25   :  { %1457 = vmatmul.msk.bf16.vlgmr.msra.gmra.mxu2 %vm126_vm0, %v1656_v12  ;;  %1458 = vmatmul.msk.bf16.vlgmr.msra.gmra.mxu3 %vm126_vm0, %v1657_v13 }
  0x26   :  { %1456 = vmatmul.msk.bf16.vlgmr.msra.gmra.mxu1 %vm126_vm0, %v1655_v14  ;;  %1455 = vmatmul.msk.bf16.vlgmr.msra.gmra.mxu0 %vm126_vm0, %v1654_v15 }
  0xa3   :  { %v153_v18 = vpop.f32.mrf.mxu1  ;;  %v148_v21 = vpop.f32.mrf.mxu0 }
  0xa4   :  { %v2021_v35 = vadd.f32 %v153_v18, %v2006_v28  ;;  %v2031_v40 = vadd.f32 %v148_v21, %v2018_v34 }
  0xa8   :  { %v158_v16 = vpop.f32.mrf.mxu2  ;;  %v163_v17 = vpop.f32.mrf.mxu3 }
  0xa9   :  { %v2001_v26 = vadd.f32 %v163_v17, %v1992_v19  ;;  %v2016_v33 = vadd.f32 %v158_v16, %v1998_v25 }
  0xab   :  { %v155_v32 = vpop.f32.mrf.mxu1  ;;  %v150_v39 = vpop.f32.mrf.mxu0 }
  0xac   :  { %v2024_v36 = vadd.f32 %v155_v32, %v2008_v29  ;;  %v2034_v41 = vadd.f32 %v150_v39, %v2026_v37 }
  0xae   :  { %v185_v42 = vpack.c.bf16 %v2024_v36, %v2021_v35  ;;  %v184_v43 = vpack.c.bf16 %v2034_v41, %v2031_v40 }
  0xb0   :  { %v160_v23 = vpop.f32.mrf.mxu2  ;;  %v165_v24 = vpop.f32.mrf.mxu3 }
  0xb1   :  { %v2004_v27 = vadd.f32 %v165_v24, %v1994_v20  ;;  %v2011_v30 = vadd.f32 %v160_v23, %v1996_v22 }
  0xb3   :  { %v187_v31 = vpack.c.bf16 %v2004_v27, %v2001_v26  ;;  %v186_v38 = vpack.c.bf16 %v2011_v30, %v2016_v33 }
  0xb5   :  { %224 = vmatpush.bf16.msrb.mxu1 %v187_v31 }
  0xb9   :  { %225 = vmatpush.bf16.msrb.mxu1 %v186_v38 }
  0xbd   :  { %226 = vmatpush.bf16.msrb.mxu1 %v185_v42 }
  0xc1   :  { %227 = vmatpush.bf16.msrb.mxu1 %v184_v43 }
  0xc4   :  { %1475 = vmatmul.msk.bf16.vlgmr.msrb.gmra.mxu1 %vm126_vm0, %v1658_v44 }
  0xd4   :  { %1476 = vmatmul.msk.bf16.gmra.mxu1 %vm126_vm0, %v1659_v45 }
  0xe4   :  { %1477 = vmatmul.msk.bf16.gmra.mxu1 %vm126_vm0, %v1660_v46 }
  0xf4   :  { %1478 = vmatmul.msk.bf16.gmra.mxu1 %vm126_vm0, %v1661_v47 }
 0x141   :  { %v2044_v48 = vpop.f32.mrf.mxu1 }
 0x142   :  { %v249_v63 = vmul.f32 %v2044_v48, %v2044_v48 }
 0x149   :  { %v2046_v49 = vpop.f32.mrf.mxu1 }
 0x14a   :  { %v250_v59 = vmul.f32 %v2046_v49, %v2046_v49 }
 0x151   :  { %v2048_v50 = vpop.f32.mrf.mxu1 }
 0x152   :  { %v251_v51 = vmul.f32 %v2048_v50, %v2048_v50 }
 0x154   :  { %261 = vadd.xlane.f32.xlu2 %v251_v51 }
 0x159   :  { %v2052_v52 = vpop.f32.mrf.mxu1 }
 0x15a   :  { %v252_v53 = vmul.f32 %v2052_v52, %v2052_v52 }
 0x15c   :  { %263 = vadd.xlane.f32.xlu2 %v252_v53 }
 0x161   :  { %v2056_v54 = vpop.f32.mrf.mxu1 }
 0x162   :  { %v253_v55 = vmul.f32 %v2056_v54, %v2056_v54 }
 0x164   :  { %265 = vadd.xlane.f32.xlu1 %v253_v55 }
 0x169   :  { %v2060_v56 = vpop.f32.mrf.mxu1 }
 0x16a   :  { %v254_v57 = vmul.f32 %v2060_v56, %v2060_v56 }
 0x16c   :  { %267 = vadd.xlane.f32.xlu1 %v254_v57 }
 0x171   :  { %v2064_v58 = vpop.f32.mrf.mxu1 }
 0x172   :  { %v255_v60 = vmul.f32 %v2064_v58, %v2064_v58 }
 0x174   :  { %259 = vadd.xlane.f32.xlu1 %v250_v59  ;;  %269 = vadd.xlane.f32.xlu0 %v255_v60 }
 0x179   :  { %v2070_v61 = vpop.f32.mrf.mxu1 }
 0x17a   :  { %v256_v62 = vmul.f32 %v2070_v61, %v2070_v61 }
 0x17c   :  { %271 = vadd.xlane.f32.xlu0 %v256_v62 }
 0x184   :  { %257 = vadd.xlane.f32.xlu0 %v249_v63 }
 0x1c7   :  { %v262_v0 = vpop.xlane.xlu2 %261 }
 0x1c8   :  { %v2083_v7 = vmax.f32 %v262_v0, 1e-30 }
 0x1cf   :  { %v264_v2 = vpop.xlane.xlu2 %263 }
 0x1d0   :  { %v2080_v6 = vmax.f32 %v264_v2, 1e-30 }
 0x1d2   :  { %vm317_vm13 = vweird.f32 %v2080_v6 }
 0x1d7   :  { %v266_v1 = vpop.xlane.xlu1 %265 }
 0x1d8   :  { %v2076_v3 = vmax.f32 %v266_v1, 1e-30 }
 0x1da   :  { %vm327_vm9 = vweird.f32 %v2076_v3 }
 0x1df   :  { %v268_v4 = vpop.xlane.xlu1 %267 }
 0x1e0   :  { %v2078_v5 = vmax.f32 %v268_v4, 1e-30 }
 0x1e2   :  { %1763 = vrsqrt.f32 %v2078_v5  ;;  %vm337_vm6 = vweird.f32 %v2078_v5 }
 0x1e3   :  { %1765 = vrsqrt.f32 %v2076_v3 }
 0x1e4   :  { %1767 = vrsqrt.f32 %v2080_v6 }
 0x1e5   :  { %1769 = vrsqrt.f32 %v2083_v7 }
 0x1e7   :  { %v260_v8 = vpop.xlane.xlu1 %259  ;;  %v270_v9 = vpop.xlane.xlu0 %269 }
 0x1e8   :  { %v2088_v10 = vpop.eup %1763  ;;  %v2090_v11 = vmax.f32 %v260_v8, 1e-30  ;;  %v279_v12 = vmax.f32 %v270_v9, 1e-30 }
 0x1e9   :  { %v2092_v13 = vpop.eup %1765  ;;  %v332_v15 = vmul.f32 %v2088_v10, %v2078_v5  ;;  %vm338_vm2 = vweird.f32 %v2088_v10 }
 0x1ea   :  { %v2094_v14 = vpop.eup %1767  ;;  %1771 = vrsqrt.f32 %v279_v12  ;;  %v322_v16 = vmul.f32 %v2092_v13, %v2076_v3  ;;  %vm347_vm3 = vweird.f32 %v279_v12  ;;  %vm328_vm4 = vweird.f32 %v2092_v13  ;;  %vm2133_vm10 = vmor %vm337_vm6, %vm338_vm2 }
 0x1eb   :  { %1773 = vrsqrt.f32 %v2090_v11  ;;  %v2101_v17 = vpop.eup %1769  ;;  %v312_v18 = vmul.f32 %v2094_v14, %v2080_v6  ;;  %v333_v21 = vmul.f32 %v2088_v10, %v332_v15  ;;  %vm318_vm8 = vweird.f32 %v2094_v14  ;;  %vm2138_vm11 = vmor %vm327_vm9, %vm328_vm4 }
 0x1ec   :  { %v302_v24 = vmul.f32 %v2101_v17, %v2083_v7  ;;  %v323_v31 = vmul.f32 %v2092_v13, %v322_v16  ;;  %vm308_vm7 = vweird.f32 %v2101_v17  ;;  %vm2150_vm14 = vmor %vm317_vm13, %vm318_vm8  ;;  %vm307_vm2 = vweird.f32 %v2083_v7 }
 0x1ed   :  { %v313_v42 = vmul.f32 %v2094_v14, %v312_v18  ;;  %v334_v44 = vmul.f32 0.5, %v333_v21 }
 0x1ee   :  { %v303_v45 = vmul.f32 %v2101_v17, %v302_v24  ;;  %v324_v46 = vmul.f32 0.5, %v323_v31 }
 0x1ef   :  { %v272_v23 = vpop.xlane.xlu0 %271  ;;  %v314_v53 = vmul.f32 0.5, %v313_v42  ;;  %v335_v57 = vsub.f32 1.5, %v334_v44 }
 0x1f0   :  { %v280_v32 = vmax.f32 %v272_v23, 1e-30  ;;  %v1772_v38 = vpop.eup %1771  ;;  %v304_v62 = vmul.f32 0.5, %v303_v45  ;;  %v325_v63 = vsub.f32 1.5, %v324_v46 }
 0x1f1   :  { %v2109_v39 = vpop.eup %1773  ;;  %v342_v43 = vmul.f32 %v1772_v38, %v279_v12  ;;  %vm348_vm1 = vweird.f32 %v1772_v38  ;;  %v315_v8 = vsub.f32 1.5, %v314_v53  ;;  %v336_v15 = vmul.f32 %v2088_v10, %v335_v57 }
 0x1f2   :  { %1775 = vrsqrt.f32 %v280_v32  ;;  %v292_v51 = vmul.f32 %v2109_v39, %v2090_v11  ;;  %v305_v18 = vsub.f32 1.5, %v304_v62  ;;  %v326_v21 = vmul.f32 %v2092_v13, %v325_v63  ;;  %vm2123_vm5 = vmor %vm347_vm3, %vm348_vm1 }
 0x1f3   :  { %v343_v47 = vmul.f32 %v1772_v38, %v342_v43  ;;  %v316_v43 = vmul.f32 %v2094_v14, %v315_v8  ;;  %vm357_vm15 = vweird.f32 %v280_v32  ;;  %vm2161_vm3 = vmor %vm307_vm2, %vm308_vm7  ;;  %vm298_vm4 = vweird.f32 %v2109_v39 }
 0x1f4   :  { %v293_v2 = vmul.f32 %v2109_v39, %v292_v51  ;;  %v306_v46 = vmul.f32 %v2101_v17, %v305_v18  ;;  %v1665_v51 = vld [vmem:[#allocation4 + $0x18] sm:$0xff] }
 0x1f5   :  { %v344_v55 = vmul.f32 0.5, %v343_v47  ;;  %v330_v47 = vsel %vm2138_vm11, %v2092_v13, %v326_v21  ;;  %v320_v62 = vsel %vm2150_vm14, %v2094_v14, %v316_v43 }
 0x1f6   :  { %v294_v24 = vmul.f32 0.5, %v293_v2  ;;  %v364_v8 = vmul.f32 3.0, %v320_v62 }
 0x1f7   :  { %v258_v59 = vpop.xlane.xlu0 %257  ;;  %v345_v0 = vsub.f32 1.5, %v344_v55 }
 0x1f8   :  { %v1776_v60 = vpop.eup %1775  ;;  %v2115_v1 = vmax.f32 %v258_v59, 1e-30  ;;  %v295_v53 = vsub.f32 1.5, %v294_v24 }
 0x1f9   :  { %v352_v4 = vmul.f32 %v1776_v60, %v280_v32  ;;  %v346_v9 = vmul.f32 %v1772_v38, %v345_v0  ;;  %vm358_vm12 = vweird.f32 %v1776_v60  ;;  %v365_v0 = vmul.f32 3.0, %v330_v47  ;;  %v1664_v47 = vld [vmem:[#allocation4 + $0x10] sm:$0xff] }
 0x1fa   :  { %1777 = vrsqrt.f32 %v2115_v1  ;;  %vm359_vm1 = vmor %vm357_vm15, %vm358_vm12  ;;  %v296_v2 = vmul.f32 %v2109_v39, %v295_v53  ;;  %vm287_vm8 = vweird.f32 %v2115_v1 }
 0x1fb   :  { %v353_v16 = vmul.f32 %v1776_v60, %v352_v4  ;;  %v350_v42 = vsel %vm2123_vm5, %v1772_v38, %v346_v9  ;;  %v340_v38 = vsel %vm2133_vm10, %v2088_v10, %v336_v15  ;;  %vm297_vm5 = vweird.f32 %v2090_v11  ;;  %v1672_v15 = vld [vmem:[#allocation2 + $0x10] sm:$0xff] }
 0x1fc   :  { %v367_v3 = vmul.f32 3.0, %v350_v42  ;;  %v366_v10 = vmul.f32 3.0, %v340_v38  ;;  %vm2171_vm7 = vmor %vm297_vm5, %vm298_vm4  ;;  %v373_v21 = vmin.f32 %v365_v0, 1.0 }
 0x1fd   :  { %v354_v31 = vmul.f32 0.5, %v353_v16  ;;  %v300_v11 = vsel %vm2171_vm7, %v2109_v39, %v296_v2 }
 0x1fe   :  { %v375_v32 = vmin.f32 %v367_v3, 1.0  ;;  %v374_v14 = vmin.f32 %v366_v10, 1.0  ;;  %v1662_v3 = vld [vmem:[#allocation4] sm:$0xff] }
 0x1ff   :  { %v355_v5 = vsub.f32 1.5, %v354_v31 }
 0x200   :  { %v1778_v45 = vpop.eup %1777  ;;  %v2176_v16 = vmul.f32 %v375_v32, %v2064_v58  ;;  %v2188_v31 = vmul.f32 %v374_v14, %v2060_v56  ;;  %v372_v58 = vmin.f32 %v364_v8, 1.0 }
 0x201   :  { %v356_v55 = vmul.f32 %v1776_v60, %v355_v5  ;;  %v282_v57 = vmul.f32 %v1778_v45, %v2115_v1  ;;  %vm288_vm6 = vweird.f32 %v1778_v45  ;;  %v362_v1 = vmul.f32 3.0, %v300_v11 }
 0x202   :  { %vm289_vm9 = vmor %vm287_vm8, %vm288_vm6  ;;  %v2196_v39 = vmul.f32 %v372_v58, %v2052_v52 }
 0x203   :  { %v283_v59 = vmul.f32 %v1778_v45, %v282_v57  ;;  %v360_v6 = vsel %vm359_vm1, %v1776_v60, %v356_v55  ;;  %v310_v60 = vsel %vm2161_vm3, %v2101_v17, %v306_v46  ;;  %v370_v38 = vmin.f32 %v362_v1, 1.0 }
 0x204   :  { %v368_v63 = vmul.f32 3.0, %v360_v6  ;;  %v363_v23 = vmul.f32 3.0, %v310_v60 }
 0x205   :  { %v284_v7 = vmul.f32 0.5, %v283_v59  ;;  %v2207_v46 = vmul.f32 %v370_v38, %v2046_v49 }
 0x206   :  { %v376_v4 = vmin.f32 %v368_v63, 1.0  ;;  %v371_v12 = vmin.f32 %v363_v23, 1.0 }
 0x207   :  { %v285_v9 = vsub.f32 1.5, %v284_v7 }
 0x208   :  { %v2179_v18 = vmul.f32 %v376_v4, %v2070_v61  ;;  %v2191_v61 = vmul.f32 %v373_v21, %v2056_v54  ;;  %v2199_v56 = vmul.f32 %v371_v12, %v2048_v50  ;;  %v1663_v50 = vld [vmem:[#allocation4 + $0x8] sm:$0xff] }
 0x209   :  { %v286_v17 = vmul.f32 %v1778_v45, %v285_v9 }
 0x20a   :  { %v396_v24 = vpack.c.bf16 %v2179_v18, %v2176_v16  ;;  %v395_v44 = vpack.c.bf16 %v2188_v31, %v2191_v61 }
 0x20b   :  { %v290_v42 = vsel %vm289_vm9, %v1778_v45, %v286_v17  ;;  %v394_v45 = vpack.c.bf16 %v2196_v39, %v2199_v56 }
 0x20c   :  { %433 = vmatpush.bf16.msrb.mxu2 %v396_v24  ;;  %v361_v43 = vmul.f32 3.0, %v290_v42 }
 0x20e   :  { %v369_v5 = vmin.f32 %v361_v43, 1.0 }
 0x210   :  { %434 = vmatpush.bf16.msrb.mxu2 %v395_v44  ;;  %v2204_v54 = vmul.f32 %v369_v5, %v2044_v48 }
 0x212   :  { %v393_v52 = vpack.c.bf16 %v2207_v46, %v2204_v54 }
 0x214   :  { %435 = vmatpush.bf16.msrb.mxu2 %v394_v45 }
 0x218   :  { %436 = vmatpush.bf16.msrb.mxu2 %v393_v52 }
 0x21b   :  { %1495 = vmatmul.msk.bf16.vlgmr.msrb.gmra.mxu2 %vm126_vm0, %v1662_v3 }
 0x22b   :  { %1496 = vmatmul.msk.bf16.gmra.mxu2 %vm126_vm0, %v1663_v50 }
 0x23b   :  { %1497 = vmatmul.msk.bf16.gmra.mxu2 %vm126_vm0, %v1664_v47 }
 0x24b   :  { %1498 = vmatmul.msk.bf16.gmra.mxu2 %vm126_vm0, %v1665_v51 }
 0x29e   :  { %v2215_v48 = vpop.f32.mrf.mxu2 }
 0x29f   :  { %v458_v53 = vsub.f32 %v2031_v40, %v2215_v48 }
 0x2a6   :  { %v2217_v49 = vpop.f32.mrf.mxu2 }
 0x2a7   :  { %v459_v55 = vsub.f32 %v2034_v41, %v2217_v49 }
 0x2a9   :  { %v1701_v57 = vpack.c.bf16 %v459_v55, %v458_v53 }
 0x2ab   :  { %1702 = vst [vmem:[#allocation5 + $0x10] sm:$0xff] %v1701_v57  }
 0x2ae   :  { %v443_v10 = vpop.f32.mrf.mxu2 }
 0x2af   :  { %v460_v6 = vsub.f32 %v2021_v35, %v443_v10 }
 0x2b2   :  { %v1666_v9 = vld [vmem:[#allocation5 + $0x10] sm:$0xff] }
 0x2b6   :  { %v445_v59 = vpop.f32.mrf.mxu2 }
 0x2b7   :  { %v461_v62 = vsub.f32 %v2024_v36, %v445_v59 }
 0x2b9   :  { %v1706_v13 = vpack.c.bf16 %v461_v62, %v460_v6 }
 0x2bb   :  { %1738 = vst [vmem:[#allocation5] sm:$0xff] %v1706_v13  }
 0x2be   :  { %v448_v63 = vpop.f32.mrf.mxu2 }
 0x2bf   :  { %v462_v0 = vsub.f32 %v2016_v33, %v448_v63  ;;  %v1670_v33 = vld [vmem:[#allocation2] sm:$0xff] }
 0x2c2   :  { %v1667_v8 = vld [vmem:[#allocation5] sm:$0xff] }
 0x2c6   :  { %v450_v32 = vpop.f32.mrf.mxu2 }
 0x2c7   :  { %v463_v2 = vsub.f32 %v2011_v30, %v450_v32  ;;  %v1671_v30 = vld [vmem:[#allocation2 + $0x8] sm:$0xff] }
 0x2c9   :  { %v1711_v40 = vpack.c.bf16 %v463_v2, %v462_v0  ;;  %v1674_v0 = vld [vmem:[#allocation3] sm:$0xff]  ;;  %v1676_v2 = vld [vmem:[#allocation3 + $0x10] sm:$0xff] }
 0x2cb   :  { %1739 = vst [vmem:[#allocation5 + $0x18] sm:$0xff] %v1711_v40  }
 0x2ce   :  { %v453_v7 = vpop.f32.mrf.mxu2 }
 0x2cf   :  { %v464_v60 = vsub.f32 %v2001_v26, %v453_v7  ;;  %v1673_v26 = vld [vmem:[#allocation2 + $0x18] sm:$0xff] }
 0x2d2   :  { %v1668_v36 = vld [vmem:[#allocation5 + $0x18] sm:$0xff] }
 0x2d6   :  { %v455_v41 = vpop.f32.mrf.mxu2 }
 0x2d7   :  { %v465_v4 = vsub.f32 %v2004_v27, %v455_v41 }
 0x2d9   :  { %v1716_v14 = vpack.c.bf16 %v465_v4, %v464_v60 }
 0x2db   :  { %1740 = vst [vmem:[#allocation5 + $0x8] sm:$0xff] %v1716_v14  }
 0x2e2   :  { %v1669_v35 = vld [vmem:[#allocation5 + $0x8] sm:$0xff] }
 0x2e3   :  { %574 = vmatpush.bf16.msrb.mxu3 %v1669_v35 }
 0x2e7   :  { %575 = vmatpush.bf16.msrb.mxu3 %v1668_v36 }
 0x2eb   :  { %576 = vmatpush.bf16.msrb.mxu3 %v1667_v8 }
 0x2ef   :  { %577 = vmatpush.bf16.msrb.mxu3 %v1666_v9 }
 0x2f2   :  { %1531 = vmatmul.msk.bf16.vlgmr.msrb.gmra.mxu3 %vm126_vm0, %v1670_v33 }
 0x302   :  { %1532 = vmatmul.msk.bf16.gmra.mxu3 %vm126_vm0, %v1671_v30 }
 0x312   :  { %1533 = vmatmul.msk.bf16.gmra.mxu3 %vm126_vm0, %v1672_v15 }
 0x322   :  { %1534 = vmatmul.msk.bf16.gmra.mxu3 %vm126_vm0, %v1673_v26 }
 0x375   :  { %v579_v27 = vpop.f32.mrf.mxu3 }
 0x376   :  { %v2260_v57 = vadd.f32 %v579_v27, %v2018_v34 }
 0x37d   :  { %v581_v21 = vpop.f32.mrf.mxu3 }
 0x37e   :  { %v2256_v51 = vadd.f32 %v581_v21, %v2026_v37 }
 0x380   :  { %v616_v62 = vsub.f32 %v2256_v51, %v2217_v49 }
 0x385   :  { %v584_v23 = vpop.f32.mrf.mxu3 }
 0x386   :  { %v2252_v50 = vadd.f32 %v584_v23, %v2006_v28 }
 0x388   :  { %v617_v6 = vsub.f32 %v2252_v50, %v443_v10  ;;  %v1677_v10 = vld [vmem:[#allocation3 + $0x18] sm:$0xff] }
 0x38d   :  { %v586_v17 = vpop.f32.mrf.mxu3 }
 0x38e   :  { %v2248_v45 = vadd.f32 %v586_v17, %v2008_v29 }
 0x390   :  { %v618_v53 = vsub.f32 %v2248_v45, %v445_v59  ;;  %v1675_v59 = vld [vmem:[#allocation3 + $0x8] sm:$0xff] }
 0x392   :  { %v632_v13 = vpack.c.bf16 %v618_v53, %v617_v6 }
 0x395   :  { %v589_v11 = vpop.f32.mrf.mxu3 }
 0x396   :  { %v2243_v44 = vadd.f32 %v589_v11, %v1998_v25 }
 0x398   :  { %v619_v47 = vsub.f32 %v2243_v44, %v448_v63  ;;  %v615_v63 = vsub.f32 %v2260_v57, %v2215_v48 }
 0x39d   :  { %v591_v24 = vpop.f32.mrf.mxu3 }
 0x39e   :  { %v2237_v43 = vadd.f32 %v591_v24, %v1996_v22 }
 0x3a0   :  { %v620_v52 = vsub.f32 %v2237_v43, %v450_v32  ;;  %v631_v32 = vpack.c.bf16 %v616_v62, %v615_v63 }
 0x3a2   :  { %v633_v55 = vpack.c.bf16 %v620_v52, %v619_v47 }
 0x3a5   :  { %v594_v58 = vpop.f32.mrf.mxu3 }
 0x3a6   :  { %v2234_v42 = vadd.f32 %v594_v58, %v1992_v19 }
 0x3a8   :  { %v621_v5 = vsub.f32 %v2234_v42, %v453_v7 }
 0x3ad   :  { %v596_v12 = vpop.f32.mrf.mxu3 }
 0x3ae   :  { %v2240_v1 = vadd.f32 %v596_v12, %v1994_v20 }
 0x3b0   :  { %v622_v38 = vsub.f32 %v2240_v1, %v455_v41 }
 0x3b2   :  { %v634_v3 = vpack.c.bf16 %v622_v38, %v621_v5 }
 0x3b4   :  { %671 = vmatpush.bf16.msrb.mxu0 %v634_v3 }
 0x3b8   :  { %672 = vmatpush.bf16.msrb.mxu0 %v633_v55 }
 0x3bc   :  { %673 = vmatpush.bf16.msrb.mxu0 %v632_v13 }
 0x3c0   :  { %674 = vmatpush.bf16.msrb.mxu0 %v631_v32 }
 0x3c3   :  { %1551 = vmatmul.msk.bf16.vlgmr.msrb.gmra.mxu0 %vm126_vm0, %v1674_v0 }
 0x3d3   :  { %1552 = vmatmul.msk.bf16.gmra.mxu0 %vm126_vm0, %v1675_v59 }
 0x3e3   :  { %1553 = vmatmul.msk.bf16.gmra.mxu0 %vm126_vm0, %v1676_v2 }
 0x3f3   :  { %1554 = vmatmul.msk.bf16.gmra.mxu0 %vm126_vm0, %v1677_v10 }
 0x440   :  { %v676_v49 = vpop.f32.mrf.mxu0 }
 0x448   :  { %v678_v40 = vpop.f32.mrf.mxu0 }
 0x449   :  { %v2307_v21 = vadd.f32 %v678_v40, %v2207_v46 }
 0x44b   :  { %v713_v23 = vmul.f32 %v2307_v21, %v2307_v21 }
 0x450   :  { %v681_v7 = vpop.f32.mrf.mxu0 }
 0x451   :  { %v2300_v27 = vadd.f32 %v681_v7, %v2199_v56 }
 0x458   :  { %v683_v41 = vpop.f32.mrf.mxu0 }
 0x459   :  { %v2277_v14 = vadd.f32 %v683_v41, %v2196_v39 }
 0x45b   :  { %v715_v36 = vmul.f32 %v2277_v14, %v2277_v14 }
 0x460   :  { %v686_v48 = vpop.f32.mrf.mxu0 }
 0x461   :  { %v2272_v60 = vadd.f32 %v686_v48, %v2191_v61 }
 0x463   :  { %v716_v4 = vmul.f32 %v2272_v60, %v2272_v60 }
 0x465   :  { %728 = vadd.xlane.f32.xlu1 %v716_v4 }
 0x468   :  { %v688_v35 = vpop.f32.mrf.mxu0 }
 0x469   :  { %v2287_v33 = vadd.f32 %v688_v35, %v2188_v31 }
 0x46b   :  { %v717_v15 = vmul.f32 %v2287_v33, %v2287_v33 }
 0x46d   :  { %726 = vadd.xlane.f32.xlu1 %v715_v36 }
 0x470   :  { %v691_v8 = vpop.f32.mrf.mxu0 }
 0x471   :  { %v2282_v9 = vadd.f32 %v691_v8, %v2176_v16  ;;  %v2297_v16 = vadd.f32 %v676_v49, %v2204_v54 }
 0x473   :  { %v718_v61 = vmul.f32 %v2282_v9, %v2282_v9  ;;  %v712_v31 = vmul.f32 %v2297_v16, %v2297_v16 }
 0x475   :  { %732 = vadd.xlane.f32.xlu2 %v718_v61 }
 0x478   :  { %v693_v30 = vpop.f32.mrf.mxu0 }
 0x479   :  { %v2290_v39 = vadd.f32 %v693_v30, %v2179_v18  ;;  %v714_v18 = vmul.f32 %v2300_v27, %v2300_v27 }
 0x47b   :  { %v719_v26 = vmul.f32 %v2290_v39, %v2290_v39 }
 0x47d   :  { %730 = vadd.xlane.f32.xlu2 %v717_v15  ;;  %734 = vadd.xlane.f32.xlu0 %v719_v26 }
 0x485   :  { %720 = vadd.xlane.f32.xlu2 %v712_v31  ;;  %724 = vadd.xlane.f32.xlu0 %v714_v18 }
 0x48d   :  { %722 = vadd.xlane.f32.xlu0 %v713_v23 }
 0x4d8   :  { %v729_v54 = vpop.xlane.xlu1 %728 }
 0x4d9   :  { %v740_v17 = vmax.f32 %v729_v54, 1e-30 }
 0x4db   :  { %1779 = vrsqrt.f32 %v740_v17  ;;  %vm790_vm14 = vweird.f32 %v740_v17 }
 0x4e0   :  { %v727_v11 = vpop.xlane.xlu1 %726 }
 0x4e1   :  { %v2311_v56 = vmax.f32 %v727_v11, 1e-30  ;;  %v2313_v58 = vpop.eup %1779 }
 0x4e2   :  { %v785_v46 = vmul.f32 %v2313_v58, %v740_v17  ;;  %vm791_vm11 = vweird.f32 %v2313_v58 }
 0x4e3   :  { %1781 = vrsqrt.f32 %v2311_v56  ;;  %vm2331_vm15 = vmor %vm790_vm14, %vm791_vm11  ;;  %vm780_vm7 = vweird.f32 %v2311_v56 }
 0x4e4   :  { %v786_v38 = vmul.f32 %v2313_v58, %v785_v46 }
 0x4e6   :  { %v787_v13 = vmul.f32 0.5, %v786_v38 }
 0x4e8   :  { %v733_v24 = vpop.xlane.xlu2 %732  ;;  %v788_v59 = vsub.f32 1.5, %v787_v13 }
 0x4e9   :  { %v742_v12 = vmax.f32 %v733_v24, 1e-30  ;;  %v2317_v5 = vpop.eup %1781 }
 0x4ea   :  { %v775_v6 = vmul.f32 %v2317_v5, %v2311_v56  ;;  %v789_v61 = vmul.f32 %v2313_v58, %v788_v59  ;;  %vm781_vm1 = vweird.f32 %v2317_v5  ;;  %v1679_v59 = vld [vmem:[#allocation4 + $0x8] sm:$0xff] }
 0x4eb   :  { %1783 = vrsqrt.f32 %v742_v12  ;;  %vm810_vm12 = vweird.f32 %v742_v12  ;;  %vm2348_vm9 = vmor %vm780_vm7, %vm781_vm1 }
 0x4ec   :  { %v776_v32 = vmul.f32 %v2317_v5, %v775_v6  ;;  %v793_v11 = vsel %vm2331_vm15, %v2313_v58, %v789_v61 }
 0x4ee   :  { %v777_v4 = vmul.f32 0.5, %v776_v32 }
 0x4f0   :  { %v731_v52 = vpop.xlane.xlu2 %730  ;;  %v735_v3 = vpop.xlane.xlu0 %734  ;;  %v778_v26 = vsub.f32 1.5, %v777_v4 }
 0x4f1   :  { %v1784_v47 = vpop.eup %1783  ;;  %v741_v53 = vmax.f32 %v731_v52, 1e-30  ;;  %v743_v55 = vmax.f32 %v735_v3, 1e-30 }
 0x4f2   :  { %v805_v62 = vmul.f32 %v1784_v47, %v742_v12  ;;  %vm811_vm10 = vweird.f32 %v1784_v47 }
 0x4f3   :  { %1785 = vrsqrt.f32 %v741_v53  ;;  %vm812_vm13 = vmor %vm810_vm12, %vm811_vm10  ;;  %vm800_vm4 = vweird.f32 %v741_v53  ;;  %vm820_vm6 = vweird.f32 %v743_v55 }
 0x4f4   :  { %v806_v63 = vmul.f32 %v1784_v47, %v805_v62  ;;  %1787 = vrsqrt.f32 %v743_v55 }
 0x4f6   :  { %v807_v0 = vmul.f32 0.5, %v806_v63 }
 0x4f8   :  { %v808_v2 = vsub.f32 1.5, %v807_v0  ;;  %v721_v10 = vpop.xlane.xlu2 %720  ;;  %v725_v49 = vpop.xlane.xlu0 %724  ;;  %v828_v0 = vmul.f32 3.0, %v793_v11 }
 0x4f9   :  { %v1786_v40 = vpop.eup %1785  ;;  %v2323_v7 = vmax.f32 %v721_v10, 1e-30  ;;  %v2325_v41 = vmax.f32 %v725_v49, 1e-30 }
 0x4fa   :  { %v1788_v48 = vpop.eup %1787  ;;  %v809_v35 = vmul.f32 %v1784_v47, %v808_v2  ;;  %v795_v36 = vmul.f32 %v1786_v40, %v741_v53  ;;  %vm801_vm2 = vweird.f32 %v1786_v40 }
 0x4fb   :  { %v815_v8 = vmul.f32 %v1788_v48, %v743_v55  ;;  %1789 = vrsqrt.f32 %v2323_v7  ;;  %vm821_vm3 = vweird.f32 %v1788_v48  ;;  %vm802_vm5 = vmor %vm800_vm4, %vm801_vm2  ;;  %vm770_vm12 = vweird.f32 %v2325_v41 }
 0x4fc   :  { %v796_v30 = vmul.f32 %v1786_v40, %v795_v36  ;;  %1791 = vrsqrt.f32 %v2325_v41  ;;  %v813_v31 = vsel %vm812_vm13, %v1784_v47, %v809_v35  ;;  %v779_v47 = vmul.f32 %v2317_v5, %v778_v26  ;;  %vm822_vm8 = vmor %vm820_vm6, %vm821_vm3 }
 0x4fd   :  { %v816_v15 = vmul.f32 %v1788_v48, %v815_v8  ;;  %v830_v38 = vmul.f32 3.0, %v813_v31  ;;  %v836_v8 = vmin.f32 %v828_v0, 1.0  ;;  %vm750_vm13 = vweird.f32 %v2323_v7 }
 0x4fe   :  { %v797_v18 = vmul.f32 0.5, %v796_v30  ;;  %v783_v49 = vsel %vm2348_vm9, %v2317_v5, %v779_v47 }
 0x4ff   :  { %v817_v54 = vmul.f32 0.5, %v816_v15  ;;  %v838_v53 = vmin.f32 %v830_v38, 1.0 }
 0x500   :  { %v798_v24 = vsub.f32 1.5, %v797_v18  ;;  %v723_v12 = vpop.xlane.xlu0 %722 }
 0x501   :  { %v1790_v46 = vpop.eup %1789  ;;  %v818_v17 = vsub.f32 1.5, %v817_v54  ;;  %v2339_v52 = vmax.f32 %v723_v12, 1e-30  ;;  %v2356_v26 = vmul.f32 %v838_v53, %v2282_v9  ;;  %v2370_v12 = vmul.f32 %v836_v8, %v2272_v60  ;;  %v1680_v53 = vld [vmem:[#allocation4 + $0x10] sm:$0xff] }
 0x502   :  { %v1792_v3 = vpop.eup %1791  ;;  %v799_v6 = vmul.f32 %v1786_v40, %v798_v24  ;;  %v745_v62 = vmul.f32 %v1790_v46, %v2323_v7  ;;  %vm751_vm11 = vweird.f32 %v1790_v46 }
 0x503   :  { %v819_v58 = vmul.f32 %v1788_v48, %v818_v17  ;;  %v765_v13 = vmul.f32 %v1792_v3, %v2325_v41  ;;  %1793 = vrsqrt.f32 %v2339_v52  ;;  %vm771_vm10 = vweird.f32 %v1792_v3  ;;  %vm752_vm15 = vmor %vm750_vm13, %vm751_vm11 }
 0x504   :  { %v803_v63 = vsel %vm802_vm5, %v1786_v40, %v799_v6  ;;  %v746_v32 = vmul.f32 %v1790_v46, %v745_v62  ;;  %vm772_vm14 = vmor %vm770_vm12, %vm771_vm10  ;;  %vm760_vm2 = vweird.f32 %v2339_v52 }
 0x505   :  { %v823_v2 = vsel %vm822_vm8, %v1788_v48, %v819_v58  ;;  %v766_v10 = vmul.f32 %v1792_v3, %v765_v13  ;;  %v829_v55 = vmul.f32 3.0, %v803_v63  ;;  %v827_v48 = vmul.f32 3.0, %v783_v49 }
 0x506   :  { %v831_v4 = vmul.f32 3.0, %v823_v2  ;;  %v747_v56 = vmul.f32 0.5, %v746_v32  ;;  %v1681_v2 = vld [vmem:[#allocation4 + $0x18] sm:$0xff] }
 0x507   :  { %v767_v40 = vmul.f32 0.5, %v766_v10  ;;  %v837_v61 = vmin.f32 %v829_v55, 1.0  ;;  %v835_v41 = vmin.f32 %v827_v48, 1.0 }
 0x508   :  { %v839_v35 = vmin.f32 %v831_v4, 1.0  ;;  %v748_v36 = vsub.f32 1.5, %v747_v56 }
 0x509   :  { %v1794_v30 = vpop.eup %1793  ;;  %v768_v15 = vsub.f32 1.5, %v767_v40  ;;  %v2367_v9 = vmul.f32 %v837_v61, %v2287_v33  ;;  %v2379_v60 = vmul.f32 %v835_v41, %v2277_v14  ;;  %v1678_v14 = vld [vmem:[#allocation4] sm:$0xff] }
 0x50a   :  { %v749_v31 = vmul.f32 %v1790_v46, %v748_v36  ;;  %v755_v18 = vmul.f32 %v1794_v30, %v2339_v52  ;;  %v2360_v5 = vmul.f32 %v839_v35, %v2290_v39  ;;  %vm761_vm1 = vweird.f32 %v1794_v30 }
 0x50b   :  { %v769_v23 = vmul.f32 %v1792_v3, %v768_v15  ;;  %v858_v7 = vpack.c.bf16 %v2367_v9, %v2370_v12  ;;  %vm762_vm3 = vmor %vm760_vm2, %vm761_vm1 }
 0x50c   :  { %v756_v54 = vmul.f32 %v1794_v30, %v755_v18  ;;  %v859_v11 = vpack.c.bf16 %v2360_v5, %v2356_v26  ;;  %v753_v39 = vsel %vm752_vm15, %v1790_v46, %v749_v31 }
 0x50d   :  { %v773_v24 = vsel %vm772_vm14, %v1792_v3, %v769_v23  ;;  %v824_v62 = vmul.f32 3.0, %v753_v39 }
 0x50e   :  { %v757_v38 = vmul.f32 0.5, %v756_v54  ;;  %896 = vmatpush.bf16.msra.mxu1 %v859_v11  ;;  %v826_v17 = vmul.f32 3.0, %v773_v24  ;;  %v1688_v24 = vld [vmem:[#allocation2 + $0x10] sm:$0xff] }
 0x50f   :  { %v832_v63 = vmin.f32 %v824_v62, 1.0 }
 0x510   :  { %v758_v47 = vsub.f32 1.5, %v757_v38  ;;  %v834_v6 = vmin.f32 %v826_v17, 1.0 }
 0x511   :  { %v2384_v0 = vmul.f32 %v832_v63, %v2297_v16 }
 0x512   :  { %v759_v58 = vmul.f32 %v1794_v30, %v758_v47  ;;  %897 = vmatpush.bf16.msra.mxu1 %v858_v7  ;;  %v2376_v33 = vmul.f32 %v834_v6, %v2300_v27 }
 0x514   :  { %v763_v46 = vsel %vm762_vm3, %v1794_v30, %v759_v58  ;;  %v857_v3 = vpack.c.bf16 %v2379_v60, %v2376_v33 }
 0x515   :  { %v825_v13 = vmul.f32 3.0, %v763_v46 }
 0x516   :  { %898 = vmatpush.bf16.msra.mxu1 %v857_v3 }
 0x517   :  { %v833_v32 = vmin.f32 %v825_v13, 1.0 }
 0x519   :  { %v2387_v52 = vmul.f32 %v833_v32, %v2307_v21 }
 0x51b   :  { %v856_v27 = vpack.c.bf16 %v2387_v52, %v2384_v0 }
 0x51d   :  { %899 = vmatpush.bf16.msra.mxu1 %v856_v27 }
 0x520   :  { %1571 = vmatmul.msk.bf16.vlgmr.msra.gmra.mxu1 %vm126_vm0, %v1678_v14 }
 0x530   :  { %1572 = vmatmul.msk.bf16.gmra.mxu1 %vm126_vm0, %v1679_v59 }
 0x540   :  { %1573 = vmatmul.msk.bf16.gmra.mxu1 %vm126_vm0, %v1680_v53 }
 0x550   :  { %1574 = vmatmul.msk.bf16.gmra.mxu1 %vm126_vm0, %v1681_v2 }
 0x59d   :  { %v2395_v16 = vpop.f32.mrf.mxu1 }
 0x59e   :  { %v921_v10 = vsub.f32 %v2260_v57, %v2395_v16 }
 0x5a5   :  { %v2397_v21 = vpop.f32.mrf.mxu1 }
 0x5a6   :  { %v922_v55 = vsub.f32 %v2256_v51, %v2397_v21 }
 0x5a8   :  { %v1721_v49 = vpack.c.bf16 %v922_v55, %v921_v10 }
 0x5aa   :  { %1722 = vst [vmem:[#allocation5 + $0x10] sm:$0xff] %v1721_v49   ;;  %v1691_v49 = vld [vmem:[#allocation3 + $0x8] sm:$0xff] }
 0x5ad   :  { %v906_v4 = vpop.f32.mrf.mxu1 }
 0x5ae   :  { %v923_v40 = vsub.f32 %v2252_v50, %v906_v4 }
 0x5b1   :  { %v1682_v11 = vld [vmem:[#allocation5 + $0x10] sm:$0xff] }
 0x5b5   :  { %v908_v56 = vpop.f32.mrf.mxu1 }
 0x5b6   :  { %v924_v35 = vsub.f32 %v2248_v45, %v908_v56 }
 0x5b8   :  { %v1726_v36 = vpack.c.bf16 %v924_v35, %v923_v40 }
 0x5ba   :  { %1741 = vst [vmem:[#allocation5] sm:$0xff] %v1726_v36  }
 0x5bd   :  { %v911_v8 = vpop.f32.mrf.mxu1 }
 0x5be   :  { %v925_v30 = vsub.f32 %v2243_v44, %v911_v8  ;;  %v1686_v44 = vld [vmem:[#allocation2] sm:$0xff] }
 0x5c1   :  { %v1683_v54 = vld [vmem:[#allocation5] sm:$0xff] }
 0x5c5   :  { %v913_v61 = vpop.f32.mrf.mxu1 }
 0x5c6   :  { %v926_v15 = vsub.f32 %v2237_v43, %v913_v61  ;;  %v1687_v43 = vld [vmem:[#allocation2 + $0x8] sm:$0xff] }
 0x5c8   :  { %v1731_v57 = vpack.c.bf16 %v926_v15, %v925_v30 }
 0x5ca   :  { %1742 = vst [vmem:[#allocation5 + $0x18] sm:$0xff] %v1731_v57  }
 0x5cd   :  { %v916_v48 = vpop.f32.mrf.mxu1 }
 0x5ce   :  { %v927_v31 = vsub.f32 %v2234_v42, %v916_v48  ;;  %v1689_v42 = vld [vmem:[#allocation2 + $0x18] sm:$0xff] }
 0x5d1   :  { %v1684_v45 = vld [vmem:[#allocation5 + $0x18] sm:$0xff] }
 0x5d5   :  { %v918_v51 = vpop.f32.mrf.mxu1 }
 0x5d6   :  { %v928_v18 = vsub.f32 %v2240_v1, %v918_v51 }
 0x5d8   :  { %v1736_v23 = vpack.c.bf16 %v928_v18, %v927_v31 }
 0x5da   :  { %1743 = vst [vmem:[#allocation5 + $0x8] sm:$0xff] %v1736_v23  }
 0x5e1   :  { %v1685_v50 = vld [vmem:[#allocation5 + $0x8] sm:$0xff] }
 0x5e2   :  { %1037 = vmatpush.bf16.msra.mxu2 %v1685_v50 }
 0x5e6   :  { %1038 = vmatpush.bf16.msra.mxu2 %v1684_v45 }
 0x5ea   :  { %1039 = vmatpush.bf16.msra.mxu2 %v1683_v54 }
 0x5ee   :  { %1040 = vmatpush.bf16.msra.mxu2 %v1682_v11 }
 0x5f1   :  { %1607 = vmatmul.msk.bf16.vlgmr.msra.gmra.mxu2 %vm126_vm0, %v1686_v44 }
 0x601   :  { %1608 = vmatmul.msk.bf16.gmra.mxu2 %vm126_vm0, %v1687_v43 }
 0x611   :  { %1609 = vmatmul.msk.bf16.gmra.mxu2 %vm126_vm0, %v1688_v24 }
 0x621   :  { %1610 = vmatmul.msk.bf16.gmra.mxu2 %vm126_vm0, %v1689_v42 }
 0x674   :  { %v1042_v1 = vpop.f32.mrf.mxu2 }
 0x675   :  { %v2440_v53 = vadd.f32 %v1042_v1, %v2018_v34  ;;  %v1692_v34 = vld [vmem:[#allocation3 + $0x10] sm:$0xff] }
 0x677   :  { %v1078_v10 = vsub.f32 %v2440_v53, %v2395_v16 }
 0x67c   :  { %v1044_v39 = vpop.f32.mrf.mxu2 }
 0x684   :  { %v1047_v38 = vpop.f32.mrf.mxu2 }
 0x685   :  { %v2432_v14 = vadd.f32 %v1047_v38, %v2006_v28 }
 0x68c   :  { %v1049_v17 = vpop.f32.mrf.mxu2 }
 0x68d   :  { %v2428_v32 = vadd.f32 %v1049_v17, %v2008_v29  ;;  %v1080_v29 = vsub.f32 %v2432_v14, %v906_v4  ;;  %v1693_v4 = vld [vmem:[#allocation3 + $0x18] sm:$0xff] }
 0x694   :  { %v1052_v41 = vpop.f32.mrf.mxu2 }
 0x695   :  { %v2423_v3 = vadd.f32 %v1052_v41, %v1998_v25  ;;  %v1081_v25 = vsub.f32 %v2428_v32, %v908_v56 }
 0x697   :  { %v1095_v28 = vpack.c.bf16 %v1081_v25, %v1080_v29 }
 0x69c   :  { %v1054_v47 = vpop.f32.mrf.mxu2 }
 0x69d   :  { %v2417_v58 = vadd.f32 %v1054_v47, %v1996_v22  ;;  %v1082_v22 = vsub.f32 %v2423_v3, %v911_v8 }
 0x6a4   :  { %v1057_v7 = vpop.f32.mrf.mxu2 }
 0x6a5   :  { %v2414_v6 = vadd.f32 %v1057_v7, %v1992_v19  ;;  %v1083_v19 = vsub.f32 %v2417_v58, %v913_v61 }
 0x6a7   :  { %v1084_v13 = vsub.f32 %v2414_v6, %v916_v48  ;;  %v1096_v59 = vpack.c.bf16 %v1083_v19, %v1082_v22 }
 0x6ac   :  { %v1059_v62 = vpop.f32.mrf.mxu2 }
 0x6ad   :  { %v2420_v46 = vadd.f32 %v1059_v62, %v1994_v20  ;;  %v2436_v20 = vadd.f32 %v1044_v39, %v2026_v37  ;;  %v1690_v37 = vld [vmem:[#allocation3] sm:$0xff] }
 0x6af   :  { %v1085_v63 = vsub.f32 %v2420_v46, %v918_v51  ;;  %v1079_v2 = vsub.f32 %v2436_v20, %v2397_v21 }
 0x6b1   :  { %v1097_v27 = vpack.c.bf16 %v1085_v63, %v1084_v13  ;;  %v1094_v55 = vpack.c.bf16 %v1079_v2, %v1078_v10 }
 0x6b3   :  { %1134 = vmatpush.bf16.msra.mxu3 %v1097_v27 }
 0x6b7   :  { %1135 = vmatpush.bf16.msra.mxu3 %v1096_v59 }
 0x6bb   :  { %1136 = vmatpush.bf16.msra.mxu3 %v1095_v28 }
 0x6bf   :  { %1137 = vmatpush.bf16.msra.mxu3 %v1094_v55 }
 0x6c2   :  { %1627 = vmatmul.msk.bf16.vlgmr.msra.gmra.mxu3 %vm126_vm0, %v1690_v37 }
 0x6d2   :  { %1628 = vmatmul.msk.bf16.gmra.mxu3 %vm126_vm0, %v1691_v49 }
 0x6e2   :  { %1629 = vmatmul.msk.bf16.gmra.mxu3 %vm126_vm0, %v1692_v34 }
 0x6f2   :  { %1630 = vmatmul.msk.bf16.gmra.mxu3 %vm126_vm0, %v1693_v4 }
 0x745   :  { %v1139_v21 = vpop.f32.mrf.mxu3 }
 0x74d   :  { %v1141_v56 = vpop.f32.mrf.mxu3 }
 0x74e   :  { %v2487_v45 = vadd.f32 %v1141_v56, %v2387_v52 }
 0x750   :  { %v1176_v54 = vmul.f32 %v2487_v45, %v2487_v45 }
 0x755   :  { %v1144_v40 = vpop.f32.mrf.mxu3 }
 0x756   :  { %v2480_v50 = vadd.f32 %v1144_v40, %v2376_v33 }
 0x75d   :  { %v1146_v35 = vpop.f32.mrf.mxu3 }
 0x75e   :  { %v2457_v61 = vadd.f32 %v1146_v35, %v2379_v60 }
 0x760   :  { %v1178_v15 = vmul.f32 %v2457_v61, %v2457_v61 }
 0x765   :  { %v1149_v16 = vpop.f32.mrf.mxu3 }
 0x766   :  { %v2452_v36 = vadd.f32 %v1149_v16, %v2370_v12 }
 0x768   :  { %v1179_v8 = vmul.f32 %v2452_v36, %v2452_v36 }
 0x76a   :  { %1191 = vadd.xlane.f32.xlu0 %v1179_v8 }
 0x76d   :  { %v1151_v30 = vpop.f32.mrf.mxu3 }
 0x76e   :  { %v2467_v51 = vadd.f32 %v1151_v30, %v2367_v9 }
 0x770   :  { %v1180_v18 = vmul.f32 %v2467_v51, %v2467_v51 }
 0x772   :  { %1189 = vadd.xlane.f32.xlu0 %v1178_v15 }
 0x775   :  { %v1154_v57 = vpop.f32.mrf.mxu3 }
 0x776   :  { %v2462_v48 = vadd.f32 %v1154_v57, %v2356_v26  ;;  %v2477_v26 = vadd.f32 %v1139_v21, %v2384_v0 }
 0x778   :  { %v1181_v12 = vmul.f32 %v2462_v48, %v2462_v48  ;;  %v1175_v9 = vmul.f32 %v2477_v26, %v2477_v26 }
 0x77a   :  { %1195 = vadd.xlane.f32.xlu1 %v1181_v12 }
 0x77d   :  { %v1156_v31 = vpop.f32.mrf.mxu3 }
 0x77e   :  { %v2470_v60 = vadd.f32 %v1156_v31, %v2360_v5  ;;  %v1177_v5 = vmul.f32 %v2480_v50, %v2480_v50 }
 0x780   :  { %v1182_v23 = vmul.f32 %v2470_v60, %v2470_v60 }
 0x782   :  { %1193 = vadd.xlane.f32.xlu1 %v1180_v18  ;;  %1197 = vadd.xlane.f32.xlu2 %v1182_v23 }
 0x78a   :  { %1183 = vadd.xlane.f32.xlu1 %v1175_v9  ;;  %1187 = vadd.xlane.f32.xlu2 %v1177_v5 }
 0x792   :  { %1185 = vadd.xlane.f32.xlu2 %v1176_v54 }
 0x7dd   :  { %v1192_v0 = vpop.xlane.xlu0 %1191 }
 0x7de   :  { %v1203_v11 = vmax.f32 %v1192_v0, 1e-30 }
 0x7e0   :  { %1795 = vrsqrt.f32 %v1203_v11  ;;  %vm1253_vm8 = vweird.f32 %v1203_v11 }
 0x7e5   :  { %v1190_v44 = vpop.xlane.xlu0 %1189 }
 0x7e6   :  { %v2491_v33 = vmax.f32 %v1190_v44, 1e-30  ;;  %v2493_v24 = vpop.eup %1795 }
 0x7e7   :  { %v1248_v52 = vmul.f32 %v2493_v24, %v1203_v11  ;;  %vm1254_vm5 = vweird.f32 %v2493_v24 }
 0x7e8   :  { %1797 = vrsqrt.f32 %v2491_v33  ;;  %vm2511_vm9 = vmor %vm1253_vm8, %vm1254_vm5  ;;  %vm1243_vm1 = vweird.f32 %v2491_v33 }
 0x7e9   :  { %v1249_v39 = vmul.f32 %v2493_v24, %v1248_v52 }
 0x7eb   :  { %v1250_v63 = vmul.f32 0.5, %v1249_v39 }
 0x7ed   :  { %v1196_v43 = vpop.xlane.xlu1 %1195  ;;  %v1251_v25 = vsub.f32 1.5, %v1250_v63 }
 0x7ee   :  { %v1205_v42 = vmax.f32 %v1196_v43, 1e-30  ;;  %v2497_v1 = vpop.eup %1797 }
 0x7ef   :  { %v1238_v62 = vmul.f32 %v2497_v1, %v2491_v33  ;;  %v1252_v56 = vmul.f32 %v2493_v24, %v1251_v25  ;;  %vm1244_vm10 = vweird.f32 %v2497_v1 }
 0x7f0   :  { %1799 = vrsqrt.f32 %v1205_v42  ;;  %vm1273_vm6 = vweird.f32 %v1205_v42  ;;  %vm1245_vm3 = vmor %vm1243_vm1, %vm1244_vm10 }
 0x7f1   :  { %v1239_v27 = vmul.f32 %v2497_v1, %v1238_v62  ;;  %v1256_v12 = vsel %vm2511_vm9, %v2493_v24, %v1252_v56 }
 0x7f3   :  { %v1240_v49 = vmul.f32 0.5, %v1239_v27 }
 0x7f5   :  { %v1194_v38 = vpop.xlane.xlu1 %1193  ;;  %v1198_v17 = vpop.xlane.xlu2 %1197  ;;  %v1241_v16 = vsub.f32 1.5, %v1240_v49 }
 0x7f6   :  { %v1800_v41 = vpop.eup %1799  ;;  %v1204_v47 = vmax.f32 %v1194_v38, 1e-30  ;;  %v1206_v7 = vmax.f32 %v1198_v17, 1e-30  ;;  %v1291_v38 = vmul.f32 3.0, %v1256_v12 }
 0x7f7   :  { %v1268_v13 = vmul.f32 %v1800_v41, %v1205_v42  ;;  %vm1274_vm4 = vweird.f32 %v1800_v41  ;;  %v1242_v11 = vmul.f32 %v2497_v1, %v1241_v16 }
 0x7f8   :  { %1801 = vrsqrt.f32 %v1204_v47  ;;  %vm1275_vm7 = vmor %vm1273_vm6, %vm1274_vm4  ;;  %vm1263_vm13 = vweird.f32 %v1204_v47  ;;  %vm1283_vm15 = vweird.f32 %v1206_v7  ;;  %v1299_v25 = vmin.f32 %v1291_v38, 1.0 }
 0x7f9   :  { %v1269_v19 = vmul.f32 %v1800_v41, %v1268_v13  ;;  %1803 = vrsqrt.f32 %v1206_v7  ;;  %v1246_v13 = vsel %vm1245_vm3, %v2497_v1, %v1242_v11 }
 0x7fb   :  { %v1270_v22 = vmul.f32 0.5, %v1269_v19 }
 0x7fd   :  { %v1271_v59 = vsub.f32 1.5, %v1270_v22  ;;  %v1184_v29 = vpop.xlane.xlu1 %1183  ;;  %v1188_v2 = vpop.xlane.xlu2 %1187 }
 0x7fe   :  { %v1802_v28 = vpop.eup %1801  ;;  %v2503_v10 = vmax.f32 %v1184_v29, 1e-30  ;;  %v2505_v55 = vmax.f32 %v1188_v2, 1e-30  ;;  %v1290_v29 = vmul.f32 3.0, %v1246_v13 }
 0x7ff   :  { %v1804_v37 = vpop.eup %1803  ;;  %v1272_v34 = vmul.f32 %v1800_v41, %v1271_v59  ;;  %v1258_v4 = vmul.f32 %v1802_v28, %v1204_v47  ;;  %vm1264_vm11 = vweird.f32 %v1802_v28 }
 0x800   :  { %v1278_v21 = vmul.f32 %v1804_v37, %v1206_v7  ;;  %1805 = vrsqrt.f32 %v2503_v10  ;;  %vm1284_vm12 = vweird.f32 %v1804_v37  ;;  %vm1265_vm14 = vmor %vm1263_vm13, %vm1264_vm11  ;;  %vm1233_vm6 = vweird.f32 %v2505_v55 }
 0x801   :  { %v1259_v40 = vmul.f32 %v1802_v28, %v1258_v4  ;;  %1807 = vrsqrt.f32 %v2505_v55  ;;  %v1276_v8 = vsel %vm1275_vm7, %v1800_v41, %v1272_v34  ;;  %vm1285_vm2 = vmor %vm1283_vm15, %vm1284_vm12  ;;  %vm1213_vm7 = vweird.f32 %v2503_v10 }
 0x802   :  { %v1279_v35 = vmul.f32 %v1804_v37, %v1278_v21  ;;  %v1293_v9 = vmul.f32 3.0, %v1276_v8 }
 0x803   :  { %v1260_v30 = vmul.f32 0.5, %v1259_v40 }
 0x804   :  { %v1280_v57 = vmul.f32 0.5, %v1279_v35  ;;  %v1301_v17 = vmin.f32 %v1293_v9, 1.0 }
 0x805   :  { %v1261_v31 = vsub.f32 1.5, %v1260_v30  ;;  %v1186_v18 = vpop.xlane.xlu2 %1185  ;;  %v1298_v30 = vmin.f32 %v1290_v29, 1.0 }
 0x806   :  { %v1806_v23 = vpop.eup %1805  ;;  %v1281_v5 = vsub.f32 1.5, %v1280_v57  ;;  %v2519_v54 = vmax.f32 %v1186_v18, 1e-30 }
 0x807   :  { %v1808_v0 = vpop.eup %1807  ;;  %v1262_v44 = vmul.f32 %v1802_v28, %v1261_v31  ;;  %v1208_v43 = vmul.f32 %v1806_v23, %v2503_v10  ;;  %vm1214_vm5 = vweird.f32 %v1806_v23  ;;  %v1306_v12 = vmul.f32 %v1298_v30, %v2457_v61  ;;  %v1696_v61 = vld [vmem:[#allocation4 + $0x10] sm:$0xff] }
 0x808   :  { %v1282_v24 = vmul.f32 %v1804_v37, %v1281_v5  ;;  %v1228_v42 = vmul.f32 %v1808_v0, %v2505_v55  ;;  %1809 = vrsqrt.f32 %v2519_v54  ;;  %vm1234_vm4 = vweird.f32 %v1808_v0  ;;  %vm1215_vm9 = vmor %vm1213_vm7, %vm1214_vm5 }
 0x809   :  { %v1266_v52 = vsel %vm1265_vm14, %v1802_v28, %v1262_v44  ;;  %v1209_v39 = vmul.f32 %v1806_v23, %v1208_v43  ;;  %v1309_v28 = vmul.f32 %v1301_v17, %v2462_v48  ;;  %vm1235_vm8 = vmor %vm1233_vm6, %vm1234_vm4  ;;  %v1307_v48 = vmul.f32 %v1299_v25, %v2452_v36  ;;  %v1694_v44 = vld [vmem:[#allocation4] sm:$0xff] }
 0x80a   :  { %v1286_v41 = vsel %vm1285_vm2, %v1804_v37, %v1282_v24  ;;  %v1229_v47 = vmul.f32 %v1808_v0, %v1228_v42  ;;  %v1292_v62 = vmul.f32 3.0, %v1266_v52  ;;  %vm1223_vm11 = vweird.f32 %v2519_v54 }
 0x80b   :  { %v1294_v7 = vmul.f32 3.0, %v1286_v41  ;;  %v1210_v63 = vmul.f32 0.5, %v1209_v39 }
 0x80c   :  { %v1230_v19 = vmul.f32 0.5, %v1229_v47  ;;  %v1300_v33 = vmin.f32 %v1292_v62, 1.0 }
 0x80d   :  { %v1302_v27 = vmin.f32 %v1294_v7, 1.0  ;;  %v1211_v22 = vsub.f32 1.5, %v1210_v63 }
 0x80e   :  { %v1810_v59 = vpop.eup %1809  ;;  %v1231_v2 = vsub.f32 1.5, %v1230_v19  ;;  %v1308_v56 = vmul.f32 %v1300_v33, %v2467_v51 }
 0x80f   :  { %v1212_v49 = vmul.f32 %v1806_v23, %v1211_v22  ;;  %v1218_v37 = vmul.f32 %v1810_v59, %v2519_v54  ;;  %v1310_v34 = vmul.f32 %v1302_v27, %v2470_v60  ;;  %vm1224_vm10 = vweird.f32 %v1810_v59  ;;  %v1695_v54 = vld [vmem:[#allocation4 + $0x8] sm:$0xff] }
 0x810   :  { %v1232_v1 = vmul.f32 %v1808_v0, %v1231_v2  ;;  %v1321_v15 = vpack.c.bf16 %v1308_v56, %v1307_v48  ;;  %vm1225_vm12 = vmor %vm1223_vm11, %vm1224_vm10 }
 0x811   :  { %v1219_v4 = vmul.f32 %v1810_v59, %v1218_v37  ;;  %v1322_v21 = vpack.c.bf16 %v1310_v34, %v1309_v28  ;;  %v1216_v35 = vsel %vm1215_vm9, %v1806_v23, %v1212_v49 }
 0x812   :  { %v1236_v40 = vsel %vm1235_vm8, %v1808_v0, %v1232_v1  ;;  %v1287_v57 = vmul.f32 3.0, %v1216_v35 }
 0x813   :  { %v1220_v16 = vmul.f32 0.5, %v1219_v4  ;;  %1359 = vmatpush.bf16.msra.mxu0 %v1322_v21  ;;  %v1289_v8 = vmul.f32 3.0, %v1236_v40 }
 0x814   :  { %v1295_v23 = vmin.f32 %v1287_v57, 1.0 }
 0x815   :  { %v1221_v60 = vsub.f32 1.5, %v1220_v16  ;;  %v1297_v55 = vmin.f32 %v1289_v8, 1.0 }
 0x816   :  { %v1303_v5 = vmul.f32 %v1295_v23, %v2477_v26 }
 0x817   :  { %v1222_v10 = vmul.f32 %v1810_v59, %v1221_v60  ;;  %1360 = vmatpush.bf16.msra.mxu0 %v1321_v15  ;;  %v1305_v51 = vmul.f32 %v1297_v55, %v2480_v50  ;;  %v1697_v50 = vld [vmem:[#allocation4 + $0x18] sm:$0xff] }
 0x819   :  { %v1226_v36 = vsel %vm1225_vm12, %v1810_v59, %v1222_v10  ;;  %v1320_v31 = vpack.c.bf16 %v1306_v12, %v1305_v51 }
 0x81a   :  { %v1288_v18 = vmul.f32 3.0, %v1226_v36 }
 0x81b   :  { %1361 = vmatpush.bf16.msra.mxu0 %v1320_v31 }
 0x81c   :  { %v1296_v9 = vmin.f32 %v1288_v18, 1.0 }
 0x81e   :  { %v1304_v0 = vmul.f32 %v1296_v9, %v2487_v45 }
 0x820   :  { %v1319_v11 = vpack.c.bf16 %v1304_v0, %v1303_v5 }
 0x822   :  { %1362 = vmatpush.bf16.msra.mxu0 %v1319_v11 }
 0x825   :  { %1647 = vmatmul.msk.bf16.vlgmr.msra.gmra.mxu0 %vm126_vm0, %v1694_v44 }
 0x835   :  { %1648 = vmatmul.msk.bf16.gmra.mxu0 %vm126_vm0, %v1695_v54 }
 0x845   :  { %1649 = vmatmul.msk.bf16.gmra.mxu0 %vm126_vm0, %v1696_v61 }
 0x855   :  { %1650 = vmatmul.msk.bf16.gmra.mxu0 %vm126_vm0, %v1697_v50 }
 0x8a2   :  { %v1364_v43 = vpop.f32.mrf.mxu0 }
 0x8a3   :  { %v1384_v24 = vsub.f32 %v2440_v53, %v1364_v43 }
 0x8a5   :  { %1392 = vst [vmem:[#allocation12] sm:$0xff] %v1384_v24 }
 0x8aa   :  { %v1366_v26 = vpop.f32.mrf.mxu0 }
 0x8ab   :  { %v1385_v45 = vsub.f32 %v2436_v20, %v1366_v26 }
 0x8ad   :  { %1393 = vst [vmem:[#allocation12 + $0x8] sm:$0xff] %v1385_v45 }
 0x8b2   :  { %v1369_v42 = vpop.f32.mrf.mxu0 }
 0x8b3   :  { %v1386_v52 = vsub.f32 %v2432_v14, %v1369_v42 }
 0x8b5   :  { %1394 = vst [vmem:[#allocation12 + $0x10] sm:$0xff] %v1386_v52 }
 0x8ba   :  { %v1371_v39 = vpop.f32.mrf.mxu0 }
 0x8bb   :  { %v1387_v38 = vsub.f32 %v2428_v32, %v1371_v39 }
 0x8bd   :  { %1395 = vst [vmem:[#allocation12 + $0x18] sm:$0xff] %v1387_v38 }
 0x8c2   :  { %v1374_v17 = vpop.f32.mrf.mxu0 }
 0x8c3   :  { %v1388_v41 = vsub.f32 %v2423_v3, %v1374_v17 }
 0x8c5   :  { %1396 = vst [vmem:[#allocation12 + $0x20] sm:$0xff] %v1388_v41 }
 0x8ca   :  { %v1376_v47 = vpop.f32.mrf.mxu0 }
 0x8cb   :  { %v1389_v53 = vsub.f32 %v2417_v58, %v1376_v47 }
 0x8cd   :  { %1397 = vst [vmem:[#allocation12 + $0x28] sm:$0xff] %v1389_v53 }
 0x8d2   :  { %v1379_v62 = vpop.f32.mrf.mxu0 }
 0x8d3   :  { %v1390_v20 = vsub.f32 %v2414_v6, %v1379_v62 }
 0x8d5   :  { %1398 = vst [vmem:[#allocation12 + $0x30] sm:$0xff] %v1390_v20 }
 0x8da   :  { %v1381_v32 = vpop.f32.mrf.mxu0 }
 0x8db   :  { %v1391_v14 = vsub.f32 %v2420_v46, %v1381_v32 }
 0x8dd   :  { %1399 = vst [vmem:[#allocation12 + $0x38] sm:$0xff] %v1391_v14 }
 0x8de   :  { %1412 = dma.vmem_to_hbm [thread:$0]  %s1405_s3, 1024, %s1407_s11, [#allocation11], %s1942_s20, %s1942_s20, %s1943_s21  }
 0x8df   :  { %1939 = dma.done.wait [#allocation11], 1024  }
 0x8e0   :  { %1940 = vsyncadd [#allocation11], 4294966272 }
 0x8e1   :  { %1417 = vsyncpa [#allocation10], 1 }
 0x8e2   :  { %1418 = vsyncpa [#allocation11], 1 }
 0x8e3   :  { %1419 = vsyncmov [#allocation8] }
 0x8e6   :  { %s1420_s12 = vpop.sfrf %1419 }
 0x8e7   :  { %p1651_p0 = scmp.ne.s32.totalorder %s1420_s12, 0 }
 0x8e9   :  { %1424 = shalt.err (%p1651_p0)  }
 0x8ea   :  { %1426 = vsyncmov [#allocation8 + $0x1] }
 0x8ed   :  { %s1427_s4 = vpop.sfrf %1426 }
 0x8ee   :  { %p1652_p1 = scmp.ne.s32.totalorder %s1427_s4, 0 }
 0x8f0   :  { %1431 = shalt.err (%p1652_p1)  }
 0x8f1   :  { %1433 = vsyncmov [#allocation8 + $0x2] }
 0x8f4   :  { %s1434_s13 = vpop.sfrf %1433 }
 0x8f5   :  { %p1653_p2 = scmp.ne.s32.totalorder %s1434_s13, 0 }
 0x8f7   :  { %1438 = shalt.err (%p1653_p2)  }

</bundles_post_ra>
